<compile_context>
chip_gen: v7x
topology: tpu7x:2x2x1
jax: 0.10.0
libtpu: 0.0.40
codegen_flags: <defaults>
</compile_context>

<pallas_src>
import functools

import jax
import jax.numpy as jnp
import numpy as np
from jax.experimental import pallas as pl
from jax.experimental.pallas import tpu as pltpu


def make_attn_decoder_kernel(output_dim, hidden_dim, num_layers, seq_len):
    D = output_dim
    H2 = 2 * hidden_dim
    L = num_layers
    S = seq_len

    def kernel(*refs):
        (xs_ref, h0_ref, c0_ref, enc_ref,
         attn_wx_ref, attn_wh_ref, attn_b_ref,
         comb_wx_ref, comb_wa_ref, comb_b_ref) = refs[:10]
        lstm_refs = refs[10:10 + 3 * L]
        out_w_ref, out_b_ref = refs[10 + 3 * L:12 + 3 * L]
        pred_ref, h_ref, c_ref = refs[12 + 3 * L:]

        t = pl.program_id(0)

        # h_ref / c_ref are VMEM-resident output blocks (constant block index),
        # used directly as the recurrent state carried across grid steps.
        @pl.when(t == 0)
        def _init_state():
            h_ref[...] = h0_ref[...]
            c_ref[...] = c0_ref[...]

        x0 = xs_ref[0]            # (B, D)   == x[0] in torch (this step's input)
        h_top = h_ref[0]          # (B, 2H)  == hidden[0][0] in torch

        # attn = Linear(2H + D, 12) on cat(x0, h_top); split matmul avoids
        # an in-kernel concat.
        logits = (jnp.dot(x0, attn_wx_ref[...], preferred_element_type=jnp.float32)
                  + jnp.dot(h_top, attn_wh_ref[...], preferred_element_type=jnp.float32)
                  + attn_b_ref[...])                            # (B, 12)

        # softmax along dim=1 (approx reciprocal -> EUP slot, VALU-free).
        m = jnp.max(logits, axis=1, keepdims=True)
        e = jnp.exp(logits - m)
        attn_w = e * pl.reciprocal(jnp.sum(e, axis=1, keepdims=True), approx=True)

        # bmm(attn_w.unsqueeze(1), enc.transpose(0,1)) -> (B, 2H), computed as a
        # weighted sum over the *leading* seq axis of seq-major enc (no
        # transpose anywhere, in or out of the kernel).
        enc = enc_ref[...]                                      # (S, B, 2H)
        attn_applied = attn_w[:, 0:1] * enc[0]
        for s in range(1, S):
            attn_applied = attn_applied + attn_w[:, s:s + 1] * enc[s]

        # attn_combine = Linear(2H + D, D) on cat(x0, attn_applied), then relu.
        comb = (jnp.dot(x0, comb_wx_ref[...], preferred_element_type=jnp.float32)
                + jnp.dot(attn_applied, comb_wa_ref[...], preferred_element_type=jnp.float32)
                + comb_b_ref[...])                              # (B, D)
        inp = jnp.maximum(comb, 0.0)

        # Single-timestep multi-layer LSTM. Gate columns are pre-reordered to
        # [i, f, o, g] so one sigmoid + one tanh covers all gates.
        # TODO(synk): recurrent dropout between layers is skipped (dropout_rate=0 / eval).
        new_h, new_c = [], []
        for l in range(L):
            w_ih = lstm_refs[3 * l][...]      # (in_l, 4*2H)
            w_hh = lstm_refs[3 * l + 1][...]  # (2H, 4*2H)
            b = lstm_refs[3 * l + 2][...]     # (1, 4*2H)
            h_prev = h_ref[l]                 # (B, 2H)
            c_prev = c_ref[l]                 # (B, 2H)

            gates = (jnp.dot(inp, w_ih, preferred_element_type=jnp.float32)
                     + jnp.dot(h_prev, w_hh, preferred_element_type=jnp.float32)
                     + b)                                       # (B, 8H)
            sig = jax.nn.sigmoid(gates[:, :3 * H2])             # i | f | o
            g_g = jnp.tanh(gates[:, 3 * H2:])                   # g
            i_g = sig[:, 0 * H2:1 * H2]
            f_g = sig[:, 1 * H2:2 * H2]
            o_g = sig[:, 2 * H2:3 * H2]

            c_new = f_g * c_prev + i_g * g_g
            h_new = o_g * jnp.tanh(c_new)
            new_h.append(h_new)
            new_c.append(c_new)
            inp = h_new

        # Deferred state stores (out of the per-layer dependency chain).
        for l in range(L):
            h_ref[l] = new_h[l]
            c_ref[l] = new_c[l]

        # out = Linear(2H, D) on the top-layer output.
        pred_ref[0] = (jnp.dot(inp, out_w_ref[...], preferred_element_type=jnp.float32)
                       + out_b_ref[...])

    return kernel


def init_params(key, output_dim, hidden_dim, num_layers):
    """Parameters in PyTorch-like layout (weights pre-transposed to (in, out);
    LSTM gate order i, f, g, o; b = b_ih + b_hh drawn as one U(-1/sqrt(fan))."""
    D, H2 = output_dim, 2 * hidden_dim
    keys = jax.random.split(key, 8 + 4 * num_layers)
    ki = iter(keys)

    def u(k, shape, fan_in):
        bound = 1.0 / np.sqrt(fan_in)
        return jax.random.uniform(k, shape, jnp.float32, -bound, bound)

    p = {}
    fan = H2 + D
    # attn: Linear(2H + D, 12), split into x-part (D, 12) and h-part (2H, 12).
    p["attn_wx"] = u(next(ki), (D, 12), fan)
    p["attn_wh"] = u(next(ki), (H2, 12), fan)
    p["attn_b"] = u(next(ki), (1, 12), fan)
    # attn_combine: Linear(2H + D, D), split into x-part and applied-part.
    p["comb_wx"] = u(next(ki), (D, D), fan)
    p["comb_wa"] = u(next(ki), (H2, D), fan)
    p["comb_b"] = u(next(ki), (1, D), fan)
    # LSTM(input=D, hidden=2H, num_layers).
    p["lstm"] = []
    for l in range(num_layers):
        in_l = D if l == 0 else H2
        w_ih = u(next(ki), (in_l, 4 * H2), H2)
        w_hh = u(next(ki), (H2, 4 * H2), H2)
        b = u(next(ki), (1, 4 * H2), H2)
        p["lstm"].append((w_ih, w_hh, b))
    # out: Linear(2H, D)
    p["out_w"] = u(next(ki), (H2, D), H2)
    p["out_b"] = u(next(ki), (1, D), H2)
    return p


def prepare_kernel_params(params, hidden_dim):
    """Reorder LSTM gate columns from torch order (i,f,g,o) to kernel order
    (i,f,o,g) once, outside jit, so the kernel can do 1 sigmoid + 1 tanh."""
    H2 = 2 * hidden_dim

    def reorder(w):
        i = w[:, 0 * H2:1 * H2]
        f = w[:, 1 * H2:2 * H2]
        g = w[:, 2 * H2:3 * H2]
        o = w[:, 3 * H2:4 * H2]
        return jnp.concatenate([i, f, o, g], axis=1)

    kp = dict(params)
    kp["lstm"] = [(reorder(w_ih), reorder(w_hh), reorder(b))
                  for (w_ih, w_hh, b) in params["lstm"]]
    return kp


def attn_decoder_decode(kparams, xs, hidden, encoder_outputs, *,
                        output_dim, hidden_dim, num_layers):
    """Fused T-step decode. xs: (T,B,D); hidden: (h,c) each (L,B,2H);
    encoder_outputs: (S,B,2H) seq-major. Returns (preds (T,B,D), (h,c))."""
    h0, c0 = hidden
    T, B, D = xs.shape
    L, _, H2 = h0.shape
    S = encoder_outputs.shape[0]
    assert D == output_dim and H2 == 2 * hidden_dim and L == num_layers

    inputs = [xs, h0, c0, encoder_outputs,
              kparams["attn_wx"], kparams["attn_wh"], kparams["attn_b"],
              kparams["comb_wx"], kparams["comb_wa"], kparams["comb_b"]]
    for (w_ih, w_hh, b) in kparams["lstm"]:
        inputs += [w_ih, w_hh, b]
    inputs += [kparams["out_w"], kparams["out_b"]]

    def resident(arr):
        # Constant block index -> fetched once, stays resident in VMEM.
        n = arr.ndim
        return pl.BlockSpec(tuple(arr.shape), lambda t, n=n: (0,) * n)

    in_specs = ([pl.BlockSpec((1, B, D), lambda t: (t, 0, 0))]      # xs per step
                + [resident(a) for a in inputs[1:]])

    out_specs = [
        pl.BlockSpec((1, B, D), lambda t: (t, 0, 0)),               # preds per step
        pl.BlockSpec((L, B, H2), lambda t: (0, 0, 0)),              # h (resident)
        pl.BlockSpec((L, B, H2), lambda t: (0, 0, 0)),              # c (resident)
    ]

    # Advisory cost estimate so XLA doesn't pessimistically serialize this tiny
    # custom call against surrounding decode-loop ops.
    flops_step = (2 * B * (D + H2) * 12          # attn linear
                  + 2 * B * S * H2               # attention-weighted sum
                  + 2 * B * (D + H2) * D         # attn_combine
                  + 2 * B * H2 * D)              # output projection
    in_l = D
    for _ in range(L):
        flops_step += 2 * B * (in_l + H2) * (4 * H2)
        in_l = H2
    trans_step = B * (S + 1) + L * B * (4 * H2 + H2)   # exp, rcp, sigmoid, tanh
    bytes_accessed = 4 * (sum(int(a.size) for a in inputs)
                          + T * B * D + 2 * L * B * H2)
    cost = pl.CostEstimate(flops=int(T * flops_step),
                           transcendentals=int(T * trans_step),
                           bytes_accessed=int(bytes_accessed))

    kernel = make_attn_decoder_kernel(output_dim, hidden_dim, num_layers, S)
    preds, h_out, c_out = pl.pallas_call(
        kernel,
        out_shape=(
            jax.ShapeDtypeStruct((T, B, D), jnp.float32),
            jax.ShapeDtypeStruct((L, B, H2), jnp.float32),
            jax.ShapeDtypeStruct((L, B, H2), jnp.float32),
        ),
        grid_spec=pltpu.PrefetchScalarGridSpec(
            num_scalar_prefetch=0,
            grid=(T,),
            in_specs=in_specs,
            out_specs=out_specs),
        compiler_params=pltpu.CompilerParams(
            dimension_semantics=("arbitrary",)),   # time recurrence: not parallel
        cost_estimate=cost,
    )(*inputs)

    return preds, (h_out, c_out)


def attn_decoder_forward(kparams, x, hidden, encoder_outputs, *,
                         output_dim, hidden_dim, num_layers):
    """Exact single-step module interface: x (1,B,D) -> (prediction (1,B,D), hidden)."""
    return attn_decoder_decode(kparams, x, hidden, encoder_outputs,
                               output_dim=output_dim, hidden_dim=hidden_dim,
                               num_layers=num_layers)


# ----------------------------- pure-JAX reference -----------------------------

def reference_step(params, x0, h, c, enc, hidden_dim, num_layers):
    """Mirrors AttnDecoder.forward exactly (torch gate order i,f,g,o)."""
    H2 = 2 * hidden_dim
    logits = x0 @ params["attn_wx"] + h[0] @ params["attn_wh"] + params["attn_b"]
    w = jax.nn.softmax(logits, axis=1)
    applied = jnp.einsum("bs,sbh->bh", w, enc)
    comb = x0 @ params["comb_wx"] + applied @ params["comb_wa"] + params["comb_b"]
    inp = jax.nn.relu(comb)
    h_new, c_new = [], []
    for l in range(num_layers):
        w_ih, w_hh, b = params["lstm"][l]
        gates = inp @ w_ih + h[l] @ w_hh + b
        i_g = jax.nn.sigmoid(gates[:, 0 * H2:1 * H2])
        f_g = jax.nn.sigmoid(gates[:, 1 * H2:2 * H2])
        g_g = jnp.tanh(gates[:, 2 * H2:3 * H2])
        o_g = jax.nn.sigmoid(gates[:, 3 * H2:4 * H2])
        cn = f_g * c[l] + i_g * g_g
        hn = o_g * jnp.tanh(cn)
        h_new.append(hn)
        c_new.append(cn)
        inp = hn
    pred = inp @ params["out_w"] + params["out_b"]
    return pred, jnp.stack(h_new), jnp.stack(c_new)


def reference_decode(params, xs, hidden, enc, hidden_dim, num_layers):
    h, c = hidden
    preds = []
    for t in range(xs.shape[0]):
        pred, h, c = reference_step(params, xs[t], h, c, enc, hidden_dim, num_layers)
        preds.append(pred)
    return jnp.stack(preds), (h, c)


if __name__ == "__main__":
    output_dim = 8
    hidden_dim = 32       # LSTM hidden size = 2*hidden_dim = 64
    num_layers = 2
    batch = 8             # multiple of 8 sublanes (perf feedback)
    seq = 12              # attention length fixed by nn.Linear(..., 12)
    steps = 4             # decode steps fused in one pallas_call

    key = jax.random.PRNGKey(0)
    k_p, k_x, k_h, k_c, k_e = jax.random.split(key, 5)

    params = init_params(k_p, output_dim, hidden_dim, num_layers)
    kparams = prepare_kernel_params(params, hidden_dim)     # gate reorder, once

    xs = jax.random.normal(k_x, (steps, batch, output_dim), jnp.float32)
    h0 = jax.random.normal(k_h, (num_layers, batch, 2 * hidden_dim), jnp.float32)
    c0 = jax.random.normal(k_c, (num_layers, batch, 2 * hidden_dim), jnp.float32)
    enc = jax.random.normal(k_e, (seq, batch, 2 * hidden_dim), jnp.float32)

    decode = jax.jit(functools.partial(attn_decoder_decode, output_dim=output_dim,
                                       hidden_dim=hidden_dim, num_layers=num_layers))
    preds, (h_T, c_T) = decode(kparams, xs, (h0, c0), enc)
    jax.block_until_ready((preds, h_T, c_T))

    # Single-step call (exact module interface), for parity with the module.
    fwd = jax.jit(functools.partial(attn_decoder_forward, output_dim=output_dim,
                                    hidden_dim=hidden_dim, num_layers=num_layers))
    pred1, (h1, c1) = fwd(kparams, xs[0:1], (h0, c0), enc)
    jax.block_until_ready((pred1, h1, c1))

    # Verify against pure-JAX reference (torch-order params).
    preds_r, (h_T_r, c_T_r) = reference_decode(params, xs, (h0, c0), enc,
                                               hidden_dim, num_layers)
    # Tolerance loosened vs 1e-5 because the in-kernel softmax uses the
    # approximate EUP reciprocal (pl.reciprocal(..., approx=True)).
    tol = dict(atol=2e-3, rtol=2e-3)
    assert np.allclose(np.asarray(preds), np.asarray(preds_r), **tol)
    assert np.allclose(np.asarray(h_T), np.asarray(h_T_r), **tol)
    assert np.allclose(np.asarray(c_T), np.asarray(c_T_r), **tol)
    assert np.allclose(np.asarray(pred1), np.asarray(preds_r[0:1]), **tol)
    assert np.allclose(np.asarray(h1), np.asarray(h_T_r * 0 + reference_step(
        params, xs[0], h0, c0, enc, hidden_dim, num_layers)[1]), **tol)

    print("KERNEL_OK")
</pallas_src>

<mosaic_0001>
module attributes {stable_mosaic.version = 11 : i64} {
  func.func @kernel(%arg0: i32, %arg1: memref<1x8x8xf32, #tpu.memory_space<vmem>>, %arg2: memref<2x8x64xf32, #tpu.memory_space<vmem>>, %arg3: memref<2x8x64xf32, #tpu.memory_space<vmem>>, %arg4: memref<12x8x64xf32, #tpu.memory_space<vmem>>, %arg5: memref<8x12xf32, #tpu.memory_space<vmem>>, %arg6: memref<64x12xf32, #tpu.memory_space<vmem>>, %arg7: memref<1x12xf32, #tpu.memory_space<vmem>>, %arg8: memref<8x8xf32, #tpu.memory_space<vmem>>, %arg9: memref<64x8xf32, #tpu.memory_space<vmem>>, %arg10: memref<1x8xf32, #tpu.memory_space<vmem>>, %arg11: memref<8x256xf32, #tpu.memory_space<vmem>>, %arg12: memref<64x256xf32, #tpu.memory_space<vmem>>, %arg13: memref<1x256xf32, #tpu.memory_space<vmem>>, %arg14: memref<64x256xf32, #tpu.memory_space<vmem>>, %arg15: memref<64x256xf32, #tpu.memory_space<vmem>>, %arg16: memref<1x256xf32, #tpu.memory_space<vmem>>, %arg17: memref<64x8xf32, #tpu.memory_space<vmem>>, %arg18: memref<1x8xf32, #tpu.memory_space<vmem>>, %arg19: memref<1x8x8xf32, #tpu.memory_space<vmem>>, %arg20: memref<2x8x64xf32, #tpu.memory_space<vmem>>, %arg21: memref<2x8x64xf32, #tpu.memory_space<vmem>>) attributes {dimension_semantics = [#tpu.dimension_semantics<arbitrary>], iteration_bounds = array<i64: 4>, scalar_prefetch = 0 : i64, scratch_operands = 0 : i64, tpu.core_type = #tpu.core_type<tc>, window_params = [{transform_indices = @transform_0, window_bounds = array<i64: 1, 8, 8>}, {pipeline_mode = #tpu.pipeline_mode<synchronous>, transform_indices = @transform_1, window_bounds = array<i64: 2, 8, 64>}, {pipeline_mode = #tpu.pipeline_mode<synchronous>, transform_indices = @transform_2, window_bounds = array<i64: 2, 8, 64>}, {pipeline_mode = #tpu.pipeline_mode<synchronous>, transform_indices = @transform_3, window_bounds = array<i64: 12, 8, 64>}, {pipeline_mode = #tpu.pipeline_mode<synchronous>, transform_indices = @transform_4, window_bounds = array<i64: 8, 12>}, {pipeline_mode = #tpu.pipeline_mode<synchronous>, transform_indices = @transform_5, window_bounds = array<i64: 64, 12>}, {pipeline_mode = #tpu.pipeline_mode<synchronous>, transform_indices = @transform_6, window_bounds = array<i64: 1, 12>}, {pipeline_mode = #tpu.pipeline_mode<synchronous>, transform_indices = @transform_7, window_bounds = array<i64: 8, 8>}, {pipeline_mode = #tpu.pipeline_mode<synchronous>, transform_indices = @transform_8, window_bounds = array<i64: 64, 8>}, {pipeline_mode = #tpu.pipeline_mode<synchronous>, transform_indices = @transform_9, window_bounds = array<i64: 1, 8>}, {pipeline_mode = #tpu.pipeline_mode<synchronous>, transform_indices = @transform_10, window_bounds = array<i64: 8, 256>}, {pipeline_mode = #tpu.pipeline_mode<synchronous>, transform_indices = @transform_11, window_bounds = array<i64: 64, 256>}, {pipeline_mode = #tpu.pipeline_mode<synchronous>, transform_indices = @transform_12, window_bounds = array<i64: 1, 256>}, {pipeline_mode = #tpu.pipeline_mode<synchronous>, transform_indices = @transform_13, window_bounds = array<i64: 64, 256>}, {pipeline_mode = #tpu.pipeline_mode<synchronous>, transform_indices = @transform_14, window_bounds = array<i64: 64, 256>}, {pipeline_mode = #tpu.pipeline_mode<synchronous>, transform_indices = @transform_15, window_bounds = array<i64: 1, 256>}, {pipeline_mode = #tpu.pipeline_mode<synchronous>, transform_indices = @transform_16, window_bounds = array<i64: 64, 8>}, {pipeline_mode = #tpu.pipeline_mode<synchronous>, transform_indices = @transform_17, window_bounds = array<i64: 1, 8>}, {transform_indices = @transform_18, window_bounds = array<i64: 1, 8, 8>}, {pipeline_mode = #tpu.pipeline_mode<synchronous>, transform_indices = @transform_19, window_bounds = array<i64: 2, 8, 64>}, {pipeline_mode = #tpu.pipeline_mode<synchronous>, transform_indices = @transform_20, window_bounds = array<i64: 2, 8, 64>}]} {
    %c0_i32 = arith.constant 0 : i32
    %0 = arith.cmpi eq, %arg0, %c0_i32 : i32
    %1 = arith.extui %0 : i1 to i32
    %c0_i32_0 = arith.constant 0 : i32
    %2 = arith.cmpi ne, %1, %c0_i32_0 : i32
    scf.if %2 {
      %c0_76 = arith.constant 0 : index
      %c0_77 = arith.constant 0 : index
      %c0_78 = arith.constant 0 : index
      %183 = vector.load %arg2[%c0_76, %c0_77, %c0_78] : memref<2x8x64xf32, #tpu.memory_space<vmem>>, vector<2x8x64xf32>
      %c0_79 = arith.constant 0 : index
      %c0_80 = arith.constant 0 : index
      %c0_81 = arith.constant 0 : index
      %184 = vector.load %arg20[%c0_79, %c0_80, %c0_81] : memref<2x8x64xf32, #tpu.memory_space<vmem>>, vector<2x8x64xf32>
      tpu.vector_store %arg20[%c0_79, %c0_80, %c0_81], %183 {strides = array<i32>} : memref<2x8x64xf32, #tpu.memory_space<vmem>>, vector<2x8x64xf32>,
      %c0_82 = arith.constant 0 : index
      %c0_83 = arith.constant 0 : index
      %c0_84 = arith.constant 0 : index
      %185 = vector.load %arg3[%c0_82, %c0_83, %c0_84] : memref<2x8x64xf32, #tpu.memory_space<vmem>>, vector<2x8x64xf32>
      %c0_85 = arith.constant 0 : index
      %c0_86 = arith.constant 0 : index
      %c0_87 = arith.constant 0 : index
      %186 = vector.load %arg21[%c0_85, %c0_86, %c0_87] : memref<2x8x64xf32, #tpu.memory_space<vmem>>, vector<2x8x64xf32>
      tpu.vector_store %arg21[%c0_85, %c0_86, %c0_87], %185 {strides = array<i32>} : memref<2x8x64xf32, #tpu.memory_space<vmem>>, vector<2x8x64xf32>,
    } else {
    }
    %c0 = arith.constant 0 : index
    %c0_1 = arith.constant 0 : index
    %c0_2 = arith.constant 0 : index
    %3 = vector.load %arg1[%c0, %c0_1, %c0_2] : memref<1x8x8xf32, #tpu.memory_space<vmem>>, vector<1x8x8xf32>
    %4 = vector.shape_cast %3 : vector<1x8x8xf32> to vector<8x8xf32>
    %c0_3 = arith.constant 0 : index
    %c0_4 = arith.constant 0 : index
    %c0_5 = arith.constant 0 : index
    %5 = vector.load %arg20[%c0_3, %c0_4, %c0_5] : memref<2x8x64xf32, #tpu.memory_space<vmem>>, vector<1x8x64xf32>
    %6 = vector.shape_cast %5 : vector<1x8x64xf32> to vector<8x64xf32>
    %c0_6 = arith.constant 0 : index
    %c0_7 = arith.constant 0 : index
    %7 = vector.load %arg5[%c0_6, %c0_7] : memref<8x12xf32, #tpu.memory_space<vmem>>, vector<8x12xf32>
    %cst = arith.constant dense<0.000000e+00> : vector<8x12xf32>
    %8 = tpu.matmul %4, %7, %cst {dimension_numbers = #tpu.dot_dimension_numbers<[1], [0], [0], [1], [0, 0, 1, 1], [], []>} : vector<8x8xf32>, vector<8x12xf32>, vector<8x12xf32> -> vector<8x12xf32>
    %c0_8 = arith.constant 0 : index
    %c0_9 = arith.constant 0 : index
    %9 = vector.load %arg6[%c0_8, %c0_9] : memref<64x12xf32, #tpu.memory_space<vmem>>, vector<64x12xf32>
    %cst_10 = arith.constant dense<0.000000e+00> : vector<8x12xf32>
    %10 = tpu.matmul %6, %9, %cst_10 {dimension_numbers = #tpu.dot_dimension_numbers<[1], [0], [0], [1], [0, 0, 1, 1], [], []>} : vector<8x64xf32>, vector<64x12xf32>, vector<8x12xf32> -> vector<8x12xf32>
    %11 = arith.addf %8, %10 : vector<8x12xf32>
    %c0_11 = arith.constant 0 : index
    %c0_12 = arith.constant 0 : index
    %12 = vector.load %arg7[%c0_11, %c0_12] : memref<1x12xf32, #tpu.memory_space<vmem>>, vector<1x12xf32>
    %13 = vector.broadcast %12 : vector<1x12xf32> to vector<8x12xf32>
    %14 = arith.addf %11, %13 : vector<8x12xf32>
    %cst_13 = arith.constant dense<0xFF800000> : vector<8xf32>
    %15 = vector.multi_reduction <maximumf>, %14, %cst_13 [1] : vector<8x12xf32> to vector<8xf32>
    %16 = vector.shape_cast %15 : vector<8xf32> to vector<8x1xf32>
    %17 = vector.broadcast %16 : vector<8x1xf32> to vector<8x12xf32>
    %18 = arith.subf %14, %17 : vector<8x12xf32>
    %19 = math.exp %18 : vector<8x12xf32>
    %cst_14 = arith.constant dense<0.000000e+00> : vector<8xf32>
    %20 = vector.multi_reduction <add>, %19, %cst_14 [1] : vector<8x12xf32> to vector<8xf32>
    %21 = vector.shape_cast %20 : vector<8xf32> to vector<8x1xf32>
    %22 = tpu.reciprocal %21 {approx = true} : vector<8x1xf32> -> vector<8x1xf32>
    %23 = vector.broadcast %22 : vector<8x1xf32> to vector<8x12xf32>
    %24 = arith.mulf %19, %23 : vector<8x12xf32>
    %c0_15 = arith.constant 0 : index
    %c0_16 = arith.constant 0 : index
    %c0_17 = arith.constant 0 : index
    %25 = vector.load %arg4[%c0_15, %c0_16, %c0_17] : memref<12x8x64xf32, #tpu.memory_space<vmem>>, vector<12x8x64xf32>
    %26 = vector.extract_strided_slice %24 {offsets = [0, 0], sizes = [8, 1], strides = [1, 1]} : vector<8x12xf32> to vector<8x1xf32>
    %27 = vector.extract_strided_slice %25 {offsets = [0, 0, 0], sizes = [1, 8, 64], strides = [1, 1, 1]} : vector<12x8x64xf32> to vector<1x8x64xf32>
    %28 = vector.shape_cast %27 : vector<1x8x64xf32> to vector<8x64xf32>
    %29 = vector.broadcast %26 : vector<8x1xf32> to vector<8x64xf32>
    %30 = arith.mulf %29, %28 : vector<8x64xf32>
    %31 = vector.extract_strided_slice %24 {offsets = [0, 1], sizes = [8, 1], strides = [1, 1]} : vector<8x12xf32> to vector<8x1xf32>
    %32 = vector.extract_strided_slice %25 {offsets = [1, 0, 0], sizes = [1, 8, 64], strides = [1, 1, 1]} : vector<12x8x64xf32> to vector<1x8x64xf32>
    %33 = vector.shape_cast %32 : vector<1x8x64xf32> to vector<8x64xf32>
    %34 = vector.broadcast %31 : vector<8x1xf32> to vector<8x64xf32>
    %35 = arith.mulf %34, %33 : vector<8x64xf32>
    %36 = arith.addf %30, %35 : vector<8x64xf32>
    %37 = vector.extract_strided_slice %24 {offsets = [0, 2], sizes = [8, 1], strides = [1, 1]} : vector<8x12xf32> to vector<8x1xf32>
    %38 = vector.extract_strided_slice %25 {offsets = [2, 0, 0], sizes = [1, 8, 64], strides = [1, 1, 1]} : vector<12x8x64xf32> to vector<1x8x64xf32>
    %39 = vector.shape_cast %38 : vector<1x8x64xf32> to vector<8x64xf32>
    %40 = vector.broadcast %37 : vector<8x1xf32> to vector<8x64xf32>
    %41 = arith.mulf %40, %39 : vector<8x64xf32>
    %42 = arith.addf %36, %41 : vector<8x64xf32>
    %43 = vector.extract_strided_slice %24 {offsets = [0, 3], sizes = [8, 1], strides = [1, 1]} : vector<8x12xf32> to vector<8x1xf32>
    %44 = vector.extract_strided_slice %25 {offsets = [3, 0, 0], sizes = [1, 8, 64], strides = [1, 1, 1]} : vector<12x8x64xf32> to vector<1x8x64xf32>
    %45 = vector.shape_cast %44 : vector<1x8x64xf32> to vector<8x64xf32>
    %46 = vector.broadcast %43 : vector<8x1xf32> to vector<8x64xf32>
    %47 = arith.mulf %46, %45 : vector<8x64xf32>
    %48 = arith.addf %42, %47 : vector<8x64xf32>
    %49 = vector.extract_strided_slice %24 {offsets = [0, 4], sizes = [8, 1], strides = [1, 1]} : vector<8x12xf32> to vector<8x1xf32>
    %50 = vector.extract_strided_slice %25 {offsets = [4, 0, 0], sizes = [1, 8, 64], strides = [1, 1, 1]} : vector<12x8x64xf32> to vector<1x8x64xf32>
    %51 = vector.shape_cast %50 : vector<1x8x64xf32> to vector<8x64xf32>
    %52 = vector.broadcast %49 : vector<8x1xf32> to vector<8x64xf32>
    %53 = arith.mulf %52, %51 : vector<8x64xf32>
    %54 = arith.addf %48, %53 : vector<8x64xf32>
    %55 = vector.extract_strided_slice %24 {offsets = [0, 5], sizes = [8, 1], strides = [1, 1]} : vector<8x12xf32> to vector<8x1xf32>
    %56 = vector.extract_strided_slice %25 {offsets = [5, 0, 0], sizes = [1, 8, 64], strides = [1, 1, 1]} : vector<12x8x64xf32> to vector<1x8x64xf32>
    %57 = vector.shape_cast %56 : vector<1x8x64xf32> to vector<8x64xf32>
    %58 = vector.broadcast %55 : vector<8x1xf32> to vector<8x64xf32>
    %59 = arith.mulf %58, %57 : vector<8x64xf32>
    %60 = arith.addf %54, %59 : vector<8x64xf32>
    %61 = vector.extract_strided_slice %24 {offsets = [0, 6], sizes = [8, 1], strides = [1, 1]} : vector<8x12xf32> to vector<8x1xf32>
    %62 = vector.extract_strided_slice %25 {offsets = [6, 0, 0], sizes = [1, 8, 64], strides = [1, 1, 1]} : vector<12x8x64xf32> to vector<1x8x64xf32>
    %63 = vector.shape_cast %62 : vector<1x8x64xf32> to vector<8x64xf32>
    %64 = vector.broadcast %61 : vector<8x1xf32> to vector<8x64xf32>
    %65 = arith.mulf %64, %63 : vector<8x64xf32>
    %66 = arith.addf %60, %65 : vector<8x64xf32>
    %67 = vector.extract_strided_slice %24 {offsets = [0, 7], sizes = [8, 1], strides = [1, 1]} : vector<8x12xf32> to vector<8x1xf32>
    %68 = vector.extract_strided_slice %25 {offsets = [7, 0, 0], sizes = [1, 8, 64], strides = [1, 1, 1]} : vector<12x8x64xf32> to vector<1x8x64xf32>
    %69 = vector.shape_cast %68 : vector<1x8x64xf32> to vector<8x64xf32>
    %70 = vector.broadcast %67 : vector<8x1xf32> to vector<8x64xf32>
    %71 = arith.mulf %70, %69 : vector<8x64xf32>
    %72 = arith.addf %66, %71 : vector<8x64xf32>
    %73 = vector.extract_strided_slice %24 {offsets = [0, 8], sizes = [8, 1], strides = [1, 1]} : vector<8x12xf32> to vector<8x1xf32>
    %74 = vector.extract_strided_slice %25 {offsets = [8, 0, 0], sizes = [1, 8, 64], strides = [1, 1, 1]} : vector<12x8x64xf32> to vector<1x8x64xf32>
    %75 = vector.shape_cast %74 : vector<1x8x64xf32> to vector<8x64xf32>
    %76 = vector.broadcast %73 : vector<8x1xf32> to vector<8x64xf32>
    %77 = arith.mulf %76, %75 : vector<8x64xf32>
    %78 = arith.addf %72, %77 : vector<8x64xf32>
    %79 = vector.extract_strided_slice %24 {offsets = [0, 9], sizes = [8, 1], strides = [1, 1]} : vector<8x12xf32> to vector<8x1xf32>
    %80 = vector.extract_strided_slice %25 {offsets = [9, 0, 0], sizes = [1, 8, 64], strides = [1, 1, 1]} : vector<12x8x64xf32> to vector<1x8x64xf32>
    %81 = vector.shape_cast %80 : vector<1x8x64xf32> to vector<8x64xf32>
    %82 = vector.broadcast %79 : vector<8x1xf32> to vector<8x64xf32>
    %83 = arith.mulf %82, %81 : vector<8x64xf32>
    %84 = arith.addf %78, %83 : vector<8x64xf32>
    %85 = vector.extract_strided_slice %24 {offsets = [0, 10], sizes = [8, 1], strides = [1, 1]} : vector<8x12xf32> to vector<8x1xf32>
    %86 = vector.extract_strided_slice %25 {offsets = [10, 0, 0], sizes = [1, 8, 64], strides = [1, 1, 1]} : vector<12x8x64xf32> to vector<1x8x64xf32>
    %87 = vector.shape_cast %86 : vector<1x8x64xf32> to vector<8x64xf32>
    %88 = vector.broadcast %85 : vector<8x1xf32> to vector<8x64xf32>
    %89 = arith.mulf %88, %87 : vector<8x64xf32>
    %90 = arith.addf %84, %89 : vector<8x64xf32>
    %91 = vector.extract_strided_slice %24 {offsets = [0, 11], sizes = [8, 1], strides = [1, 1]} : vector<8x12xf32> to vector<8x1xf32>
    %92 = vector.extract_strided_slice %25 {offsets = [11, 0, 0], sizes = [1, 8, 64], strides = [1, 1, 1]} : vector<12x8x64xf32> to vector<1x8x64xf32>
    %93 = vector.shape_cast %92 : vector<1x8x64xf32> to vector<8x64xf32>
    %94 = vector.broadcast %91 : vector<8x1xf32> to vector<8x64xf32>
    %95 = arith.mulf %94, %93 : vector<8x64xf32>
    %96 = arith.addf %90, %95 : vector<8x64xf32>
    %c0_18 = arith.constant 0 : index
    %c0_19 = arith.constant 0 : index
    %97 = vector.load %arg8[%c0_18, %c0_19] : memref<8x8xf32, #tpu.memory_space<vmem>>, vector<8x8xf32>
    %cst_20 = arith.constant dense<0.000000e+00> : vector<8x8xf32>
    %98 = tpu.matmul %4, %97, %cst_20 {dimension_numbers = #tpu.dot_dimension_numbers<[1], [0], [0], [1], [0, 0, 1, 1], [], []>} : vector<8x8xf32>, vector<8x8xf32>, vector<8x8xf32> -> vector<8x8xf32>
    %c0_21 = arith.constant 0 : index
    %c0_22 = arith.constant 0 : index
    %99 = vector.load %arg9[%c0_21, %c0_22] : memref<64x8xf32, #tpu.memory_space<vmem>>, vector<64x8xf32>
    %cst_23 = arith.constant dense<0.000000e+00> : vector<8x8xf32>
    %100 = tpu.matmul %96, %99, %cst_23 {dimension_numbers = #tpu.dot_dimension_numbers<[1], [0], [0], [1], [0, 0, 1, 1], [], []>} : vector<8x64xf32>, vector<64x8xf32>, vector<8x8xf32> -> vector<8x8xf32>
    %101 = arith.addf %98, %100 : vector<8x8xf32>
    %c0_24 = arith.constant 0 : index
    %c0_25 = arith.constant 0 : index
    %102 = vector.load %arg10[%c0_24, %c0_25] : memref<1x8xf32, #tpu.memory_space<vmem>>, vector<1x8xf32>
    %103 = vector.broadcast %102 : vector<1x8xf32> to vector<8x8xf32>
    %104 = arith.addf %101, %103 : vector<8x8xf32>
    %cst_26 = arith.constant 0.000000e+00 : f32
    %105 = vector.broadcast %cst_26 : f32 to vector<8x8xf32>
    %106 = arith.maximumf %104, %105 : vector<8x8xf32>
    %c0_27 = arith.constant 0 : index
    %c0_28 = arith.constant 0 : index
    %107 = vector.load %arg11[%c0_27, %c0_28] : memref<8x256xf32, #tpu.memory_space<vmem>>, vector<8x256xf32>
    %c0_29 = arith.constant 0 : index
    %c0_30 = arith.constant 0 : index
    %108 = vector.load %arg12[%c0_29, %c0_30] : memref<64x256xf32, #tpu.memory_space<vmem>>, vector<64x256xf32>
    %c0_31 = arith.constant 0 : index
    %c0_32 = arith.constant 0 : index
    %109 = vector.load %arg13[%c0_31, %c0_32] : memref<1x256xf32, #tpu.memory_space<vmem>>, vector<1x256xf32>
    %c0_33 = arith.constant 0 : index
    %c0_34 = arith.constant 0 : index
    %c0_35 = arith.constant 0 : index
    %110 = vector.load %arg20[%c0_33, %c0_34, %c0_35] : memref<2x8x64xf32, #tpu.memory_space<vmem>>, vector<1x8x64xf32>
    %111 = vector.shape_cast %110 : vector<1x8x64xf32> to vector<8x64xf32>
    %c0_36 = arith.constant 0 : index
    %c0_37 = arith.constant 0 : index
    %c0_38 = arith.constant 0 : index
    %112 = vector.load %arg21[%c0_36, %c0_37, %c0_38] : memref<2x8x64xf32, #tpu.memory_space<vmem>>, vector<1x8x64xf32>
    %113 = vector.shape_cast %112 : vector<1x8x64xf32> to vector<8x64xf32>
    %cst_39 = arith.constant dense<0.000000e+00> : vector<8x256xf32>
    %114 = tpu.matmul %106, %107, %cst_39 {dimension_numbers = #tpu.dot_dimension_numbers<[1], [0], [0], [1], [0, 0, 1, 1], [], []>} : vector<8x8xf32>, vector<8x256xf32>, vector<8x256xf32> -> vector<8x256xf32>
    %cst_40 = arith.constant dense<0.000000e+00> : vector<8x256xf32>
    %115 = tpu.matmul %111, %108, %cst_40 {dimension_numbers = #tpu.dot_dimension_numbers<[1], [0], [0], [1], [0, 0, 1, 1], [], []>} : vector<8x64xf32>, vector<64x256xf32>, vector<8x256xf32> -> vector<8x256xf32>
    %116 = arith.addf %114, %115 : vector<8x256xf32>
    %117 = vector.broadcast %109 : vector<1x256xf32> to vector<8x256xf32>
    %118 = arith.addf %116, %117 : vector<8x256xf32>
    %119 = vector.extract_strided_slice %118 {offsets = [0, 0], sizes = [8, 192], strides = [1, 1]} : vector<8x256xf32> to vector<8x192xf32>
    %120 = arith.negf %119 : vector<8x192xf32>
    %121 = math.exp %120 : vector<8x192xf32>
    %cst_41 = arith.constant 1.000000e+00 : f32
    %122 = vector.broadcast %cst_41 : f32 to vector<8x192xf32>
    %123 = arith.addf %122, %121 : vector<8x192xf32>
    %124 = arith.divf %122, %123 : vector<8x192xf32>
    %125 = vector.extract_strided_slice %118 {offsets = [0, 192], sizes = [8, 64], strides = [1, 1]} : vector<8x256xf32> to vector<8x64xf32>
    %126 = math.tanh %125 : vector<8x64xf32>
    %127 = vector.extract_strided_slice %124 {offsets = [0, 0], sizes = [8, 64], strides = [1, 1]} : vector<8x192xf32> to vector<8x64xf32>
    %128 = vector.extract_strided_slice %124 {offsets = [0, 64], sizes = [8, 64], strides = [1, 1]} : vector<8x192xf32> to vector<8x64xf32>
    %129 = vector.extract_strided_slice %124 {offsets = [0, 128], sizes = [8, 64], strides = [1, 1]} : vector<8x192xf32> to vector<8x64xf32>
    %130 = arith.mulf %128, %113 : vector<8x64xf32>
    %131 = arith.mulf %127, %126 : vector<8x64xf32>
    %132 = arith.addf %130, %131 : vector<8x64xf32>
    %133 = math.tanh %132 : vector<8x64xf32>
    %134 = arith.mulf %129, %133 : vector<8x64xf32>
    %c0_42 = arith.constant 0 : index
    %c0_43 = arith.constant 0 : index
    %135 = vector.load %arg14[%c0_42, %c0_43] : memref<64x256xf32, #tpu.memory_space<vmem>>, vector<64x256xf32>
    %c0_44 = arith.constant 0 : index
    %c0_45 = arith.constant 0 : index
    %136 = vector.load %arg15[%c0_44, %c0_45] : memref<64x256xf32, #tpu.memory_space<vmem>>, vector<64x256xf32>
    %c0_46 = arith.constant 0 : index
    %c0_47 = arith.constant 0 : index
    %137 = vector.load %arg16[%c0_46, %c0_47] : memref<1x256xf32, #tpu.memory_space<vmem>>, vector<1x256xf32>
    %c1 = arith.constant 1 : index
    %c0_48 = arith.constant 0 : index
    %c0_49 = arith.constant 0 : index
    %138 = vector.load %arg20[%c1, %c0_48, %c0_49] : memref<2x8x64xf32, #tpu.memory_space<vmem>>, vector<1x8x64xf32>
    %139 = vector.shape_cast %138 : vector<1x8x64xf32> to vector<8x64xf32>
    %c1_50 = arith.constant 1 : index
    %c0_51 = arith.constant 0 : index
    %c0_52 = arith.constant 0 : index
    %140 = vector.load %arg21[%c1_50, %c0_51, %c0_52] : memref<2x8x64xf32, #tpu.memory_space<vmem>>, vector<1x8x64xf32>
    %141 = vector.shape_cast %140 : vector<1x8x64xf32> to vector<8x64xf32>
    %cst_53 = arith.constant dense<0.000000e+00> : vector<8x256xf32>
    %142 = tpu.matmul %134, %135, %cst_53 {dimension_numbers = #tpu.dot_dimension_numbers<[1], [0], [0], [1], [0, 0, 1, 1], [], []>} : vector<8x64xf32>, vector<64x256xf32>, vector<8x256xf32> -> vector<8x256xf32>
    %cst_54 = arith.constant dense<0.000000e+00> : vector<8x256xf32>
    %143 = tpu.matmul %139, %136, %cst_54 {dimension_numbers = #tpu.dot_dimension_numbers<[1], [0], [0], [1], [0, 0, 1, 1], [], []>} : vector<8x64xf32>, vector<64x256xf32>, vector<8x256xf32> -> vector<8x256xf32>
    %144 = arith.addf %142, %143 : vector<8x256xf32>
    %145 = vector.broadcast %137 : vector<1x256xf32> to vector<8x256xf32>
    %146 = arith.addf %144, %145 : vector<8x256xf32>
    %147 = vector.extract_strided_slice %146 {offsets = [0, 0], sizes = [8, 192], strides = [1, 1]} : vector<8x256xf32> to vector<8x192xf32>
    %148 = arith.negf %147 : vector<8x192xf32>
    %149 = math.exp %148 : vector<8x192xf32>
    %cst_55 = arith.constant 1.000000e+00 : f32
    %150 = vector.broadcast %cst_55 : f32 to vector<8x192xf32>
    %151 = arith.addf %150, %149 : vector<8x192xf32>
    %152 = arith.divf %150, %151 : vector<8x192xf32>
    %153 = vector.extract_strided_slice %146 {offsets = [0, 192], sizes = [8, 64], strides = [1, 1]} : vector<8x256xf32> to vector<8x64xf32>
    %154 = math.tanh %153 : vector<8x64xf32>
    %155 = vector.extract_strided_slice %152 {offsets = [0, 0], sizes = [8, 64], strides = [1, 1]} : vector<8x192xf32> to vector<8x64xf32>
    %156 = vector.extract_strided_slice %152 {offsets = [0, 64], sizes = [8, 64], strides = [1, 1]} : vector<8x192xf32> to vector<8x64xf32>
    %157 = vector.extract_strided_slice %152 {offsets = [0, 128], sizes = [8, 64], strides = [1, 1]} : vector<8x192xf32> to vector<8x64xf32>
    %158 = arith.mulf %156, %141 : vector<8x64xf32>
    %159 = arith.mulf %155, %154 : vector<8x64xf32>
    %160 = arith.addf %158, %159 : vector<8x64xf32>
    %161 = math.tanh %160 : vector<8x64xf32>
    %162 = arith.mulf %157, %161 : vector<8x64xf32>
    %c0_56 = arith.constant 0 : index
    %c0_57 = arith.constant 0 : index
    %c0_58 = arith.constant 0 : index
    %163 = vector.load %arg20[%c0_56, %c0_57, %c0_58] : memref<2x8x64xf32, #tpu.memory_space<vmem>>, vector<1x8x64xf32>
    %164 = vector.shape_cast %163 : vector<1x8x64xf32> to vector<8x64xf32>
    %165 = vector.shape_cast %134 : vector<8x64xf32> to vector<1x8x64xf32>
    tpu.vector_store %arg20[%c0_56, %c0_57, %c0_58], %165 {strides = array<i32>} : memref<2x8x64xf32, #tpu.memory_space<vmem>>, vector<1x8x64xf32>,
    %c0_59 = arith.constant 0 : index
    %c0_60 = arith.constant 0 : index
    %c0_61 = arith.constant 0 : index
    %166 = vector.load %arg21[%c0_59, %c0_60, %c0_61] : memref<2x8x64xf32, #tpu.memory_space<vmem>>, vector<1x8x64xf32>
    %167 = vector.shape_cast %166 : vector<1x8x64xf32> to vector<8x64xf32>
    %168 = vector.shape_cast %132 : vector<8x64xf32> to vector<1x8x64xf32>
    tpu.vector_store %arg21[%c0_59, %c0_60, %c0_61], %168 {strides = array<i32>} : memref<2x8x64xf32, #tpu.memory_space<vmem>>, vector<1x8x64xf32>,
    %c1_62 = arith.constant 1 : index
    %c0_63 = arith.constant 0 : index
    %c0_64 = arith.constant 0 : index
    %169 = vector.load %arg20[%c1_62, %c0_63, %c0_64] : memref<2x8x64xf32, #tpu.memory_space<vmem>>, vector<1x8x64xf32>
    %170 = vector.shape_cast %169 : vector<1x8x64xf32> to vector<8x64xf32>
    %171 = vector.shape_cast %162 : vector<8x64xf32> to vector<1x8x64xf32>
    tpu.vector_store %arg20[%c1_62, %c0_63, %c0_64], %171 {strides = array<i32>} : memref<2x8x64xf32, #tpu.memory_space<vmem>>, vector<1x8x64xf32>,
    %c1_65 = arith.constant 1 : index
    %c0_66 = arith.constant 0 : index
    %c0_67 = arith.constant 0 : index
    %172 = vector.load %arg21[%c1_65, %c0_66, %c0_67] : memref<2x8x64xf32, #tpu.memory_space<vmem>>, vector<1x8x64xf32>
    %173 = vector.shape_cast %172 : vector<1x8x64xf32> to vector<8x64xf32>
    %174 = vector.shape_cast %160 : vector<8x64xf32> to vector<1x8x64xf32>
    tpu.vector_store %arg21[%c1_65, %c0_66, %c0_67], %174 {strides = array<i32>} : memref<2x8x64xf32, #tpu.memory_space<vmem>>, vector<1x8x64xf32>,
    %c0_68 = arith.constant 0 : index
    %c0_69 = arith.constant 0 : index
    %175 = vector.load %arg17[%c0_68, %c0_69] : memref<64x8xf32, #tpu.memory_space<vmem>>, vector<64x8xf32>
    %cst_70 = arith.constant dense<0.000000e+00> : vector<8x8xf32>
    %176 = tpu.matmul %162, %175, %cst_70 {dimension_numbers = #tpu.dot_dimension_numbers<[1], [0], [0], [1], [0, 0, 1, 1], [], []>} : vector<8x64xf32>, vector<64x8xf32>, vector<8x8xf32> -> vector<8x8xf32>
    %c0_71 = arith.constant 0 : index
    %c0_72 = arith.constant 0 : index
    %177 = vector.load %arg18[%c0_71, %c0_72] : memref<1x8xf32, #tpu.memory_space<vmem>>, vector<1x8xf32>
    %178 = vector.broadcast %177 : vector<1x8xf32> to vector<8x8xf32>
    %179 = arith.addf %176, %178 : vector<8x8xf32>
    %c0_73 = arith.constant 0 : index
    %c0_74 = arith.constant 0 : index
    %c0_75 = arith.constant 0 : index
    %180 = vector.load %arg19[%c0_73, %c0_74, %c0_75] : memref<1x8x8xf32, #tpu.memory_space<vmem>>, vector<1x8x8xf32>
    %181 = vector.shape_cast %180 : vector<1x8x8xf32> to vector<8x8xf32>
    %182 = vector.shape_cast %179 : vector<8x8xf32> to vector<1x8x8xf32>
    tpu.vector_store %arg19[%c0_73, %c0_74, %c0_75], %182 {strides = array<i32>} : memref<1x8x8xf32, #tpu.memory_space<vmem>>, vector<1x8x8xf32>,
    return
  }
  func.func @transform_0(%arg0: i32) -> (i32, i32, i32) {
    %c0_i32 = arith.constant 0 : i32
    %c0_i32_0 = arith.constant 0 : i32
    %c0_i32_1 = arith.constant 0 : i32
    return %arg0, %c0_i32, %c0_i32_0 : i32, i32, i32
  }
  func.func @transform_1(%arg0: i32) -> (i32, i32, i32) {
    %c0_i32 = arith.constant 0 : i32
    %c0_i32_0 = arith.constant 0 : i32
    %c0_i32_1 = arith.constant 0 : i32
    %c0_i32_2 = arith.constant 0 : i32
    return %c0_i32, %c0_i32_0, %c0_i32_1 : i32, i32, i32
  }
  func.func @transform_2(%arg0: i32) -> (i32, i32, i32) {
    %c0_i32 = arith.constant 0 : i32
    %c0_i32_0 = arith.constant 0 : i32
    %c0_i32_1 = arith.constant 0 : i32
    %c0_i32_2 = arith.constant 0 : i32
    return %c0_i32, %c0_i32_0, %c0_i32_1 : i32, i32, i32
  }
  func.func @transform_3(%arg0: i32) -> (i32, i32, i32) {
    %c0_i32 = arith.constant 0 : i32
    %c0_i32_0 = arith.constant 0 : i32
    %c0_i32_1 = arith.constant 0 : i32
    %c0_i32_2 = arith.constant 0 : i32
    return %c0_i32, %c0_i32_0, %c0_i32_1 : i32, i32, i32
  }
  func.func @transform_4(%arg0: i32) -> (i32, i32) {
    %c0_i32 = arith.constant 0 : i32
    %c0_i32_0 = arith.constant 0 : i32
    %c0_i32_1 = arith.constant 0 : i32
    return %c0_i32, %c0_i32_0 : i32, i32
  }
  func.func @transform_5(%arg0: i32) -> (i32, i32) {
    %c0_i32 = arith.constant 0 : i32
    %c0_i32_0 = arith.constant 0 : i32
    %c0_i32_1 = arith.constant 0 : i32
    return %c0_i32, %c0_i32_0 : i32, i32
  }
  func.func @transform_6(%arg0: i32) -> (i32, i32) {
    %c0_i32 = arith.constant 0 : i32
    %c0_i32_0 = arith.constant 0 : i32
    %c0_i32_1 = arith.constant 0 : i32
    return %c0_i32, %c0_i32_0 : i32, i32
  }
  func.func @transform_7(%arg0: i32) -> (i32, i32) {
    %c0_i32 = arith.constant 0 : i32
    %c0_i32_0 = arith.constant 0 : i32
    %c0_i32_1 = arith.constant 0 : i32
    return %c0_i32, %c0_i32_0 : i32, i32
  }
  func.func @transform_8(%arg0: i32) -> (i32, i32) {
    %c0_i32 = arith.constant 0 : i32
    %c0_i32_0 = arith.constant 0 : i32
    %c0_i32_1 = arith.constant 0 : i32
    return %c0_i32, %c0_i32_0 : i32, i32
  }
  func.func @transform_9(%arg0: i32) -> (i32, i32) {
    %c0_i32 = arith.constant 0 : i32
    %c0_i32_0 = arith.constant 0 : i32
    %c0_i32_1 = arith.constant 0 : i32
    return %c0_i32, %c0_i32_0 : i32, i32
  }
  func.func @transform_10(%arg0: i32) -> (i32, i32) {
    %c0_i32 = arith.constant 0 : i32
    %c0_i32_0 = arith.constant 0 : i32
    %c0_i32_1 = arith.constant 0 : i32
    return %c0_i32, %c0_i32_0 : i32, i32
  }
  func.func @transform_11(%arg0: i32) -> (i32, i32) {
    %c0_i32 = arith.constant 0 : i32
    %c0_i32_0 = arith.constant 0 : i32
    %c0_i32_1 = arith.constant 0 : i32
    return %c0_i32, %c0_i32_0 : i32, i32
  }
  func.func @transform_12(%arg0: i32) -> (i32, i32) {
    %c0_i32 = arith.constant 0 : i32
    %c0_i32_0 = arith.constant 0 : i32
    %c0_i32_1 = arith.constant 0 : i32
    return %c0_i32, %c0_i32_0 : i32, i32
  }
  func.func @transform_13(%arg0: i32) -> (i32, i32) {
    %c0_i32 = arith.constant 0 : i32
    %c0_i32_0 = arith.constant 0 : i32
    %c0_i32_1 = arith.constant 0 : i32
    return %c0_i32, %c0_i32_0 : i32, i32
  }
  func.func @transform_14(%arg0: i32) -> (i32, i32) {
    %c0_i32 = arith.constant 0 : i32
    %c0_i32_0 = arith.constant 0 : i32
    %c0_i32_1 = arith.constant 0 : i32
    return %c0_i32, %c0_i32_0 : i32, i32
  }
  func.func @transform_15(%arg0: i32) -> (i32, i32) {
    %c0_i32 = arith.constant 0 : i32
    %c0_i32_0 = arith.constant 0 : i32
    %c0_i32_1 = arith.constant 0 : i32
    return %c0_i32, %c0_i32_0 : i32, i32
  }
  func.func @transform_16(%arg0: i32) -> (i32, i32) {
    %c0_i32 = arith.constant 0 : i32
    %c0_i32_0 = arith.constant 0 : i32
    %c0_i32_1 = arith.constant 0 : i32
    return %c0_i32, %c0_i32_0 : i32, i32
  }
  func.func @transform_17(%arg0: i32) -> (i32, i32) {
    %c0_i32 = arith.constant 0 : i32
    %c0_i32_0 = arith.constant 0 : i32
    %c0_i32_1 = arith.constant 0 : i32
    return %c0_i32, %c0_i32_0 : i32, i32
  }
  func.func @transform_18(%arg0: i32) -> (i32, i32, i32) {
    %c0_i32 = arith.constant 0 : i32
    %c0_i32_0 = arith.constant 0 : i32
    %c0_i32_1 = arith.constant 0 : i32
    return %arg0, %c0_i32, %c0_i32_0 : i32, i32, i32
  }
  func.func @transform_19(%arg0: i32) -> (i32, i32, i32) {
    %c0_i32 = arith.constant 0 : i32
    %c0_i32_0 = arith.constant 0 : i32
    %c0_i32_1 = arith.constant 0 : i32
    %c0_i32_2 = arith.constant 0 : i32
    return %c0_i32, %c0_i32_0, %c0_i32_1 : i32, i32, i32
  }
  func.func @transform_20(%arg0: i32) -> (i32, i32, i32) {
    %c0_i32 = arith.constant 0 : i32
    %c0_i32_0 = arith.constant 0 : i32
    %c0_i32_1 = arith.constant 0 : i32
    %c0_i32_2 = arith.constant 0 : i32
    return %c0_i32, %c0_i32_0, %c0_i32_1 : i32, i32, i32
  }
}

</mosaic_0001>

<bundles_post_ra>
// kernel: attn_decoder_decode.1
= control target key start
LH: loop header
LB: loop body
LE: loop exit
PB: predicated region body
PF: predicated region fallthrough
CT: control target
= control target key end

     0   :  { %s3752_s0 = inlined_call_operand.hbm [shape: f32[4,8,8], index: 0, kind: input, shape index: {}]   ;;  %s3753_s1 = inlined_call_operand.vmem [shape: f32[2,8,64], index: 1, kind: input, shape index: {}]   ;;  %s3754_s2 = inlined_call_operand.hbm [shape: f32[2,8,64], index: 2, kind: input, shape index: {}]   ;;  %s3755_s3 = inlined_call_operand.hbm [shape: f32[12,8,64], index: 3, kind: input, shape index: {}]   ;;  %s3756_s4 = inlined_call_operand.hbm [shape: f32[8,12], index: 4, kind: input, shape index: {}]   ;;  %s3757_s5 = inlined_call_operand.vmem [shape: f32[64,12], index: 5, kind: input, shape index: {}]   ;;  %s3758_s6 = inlined_call_operand.vmem [shape: f32[1,12], index: 6, kind: input, shape index: {}]   ;;  %s3759_s7 = inlined_call_operand.hbm [shape: f32[8,8], index: 7, kind: input, shape index: {}]   ;;  %s3760_s8 = inlined_call_operand.vmem [shape: f32[64,8], index: 8, kind: input, shape index: {}]   ;;  %s3761_s9 = inlined_call_operand.hbm [shape: f32[1,8], index: 9, kind: input, shape index: {}]   ;;  %s3762_s10 = inlined_call_operand.hbm [shape: f32[8,256], index: 10, kind: input, shape index: {}]   ;;  %s3763_s11 = inlined_call_operand.vmem [shape: f32[64,256], index: 11, kind: input, shape index: {}]   ;;  %s3764_s12 = inlined_call_operand.hbm [shape: f32[1,256], index: 12, kind: input, shape index: {}]   ;;  %s3765_s13 = inlined_call_operand.vmem [shape: f32[64,256], index: 13, kind: input, shape index: {}]   ;;  %s3766_s14 = inlined_call_operand.hbm [shape: f32[64,256], index: 14, kind: input, shape index: {}]   ;;  %s3767_s15 = inlined_call_operand.hbm [shape: f32[1,256], index: 15, kind: input, shape index: {}]   ;;  %s3768_s16 = inlined_call_operand.vmem [shape: f32[64,8], index: 16, kind: input, shape index: {}]   ;;  %s3769_s17 = inlined_call_operand.hbm [shape: f32[1,8], index: 17, kind: input, shape index: {}]   ;;  %s3770_s18 = inlined_call_operand.hbm [shape: f32[4,8,8], index: 18, kind: output, shape index: {0}]   ;;  %s3771_s19 = inlined_call_operand.hbm [shape: f32[2,8,64], index: 19, kind: output, shape index: {1}]   ;;  %s3772_s20 = inlined_call_operand.hbm [shape: f32[2,8,64], index: 20, kind: output, shape index: {2}]  }
   0x1   :  { %3800 = sst [smem:[#allocation32_spill]] %s3752_s0 }
   0x2   :  { %3801 = sst [smem:[#allocation33_spill]] %s3753_s1 }
   0x3   :  { %3802 = sst [smem:[#allocation34_spill]] %s3754_s2 }
   0x4   :  { %3803 = sst [smem:[#allocation35_spill]] %s3755_s3 }
   0x5   :  { %3804 = sst [smem:[#allocation36_spill]] %s3756_s4 }
   0x6   :  { %3805 = sst [smem:[#allocation37_spill]] %s3757_s5 }
   0x7   :  { %3806 = sst [smem:[#allocation38_spill]] %s3758_s6 }
   0x8   :  { %3807 = sst [smem:[#allocation39_spill]] %s3759_s7 }
   0x9   :  { %3808 = sst [smem:[#allocation40_spill]] %s3760_s8 }
   0xa   :  { %3809 = sst [smem:[#allocation41_spill]] %s3761_s9 }
   0xb   :  { %3810 = sst [smem:[#allocation42_spill]] %s3762_s10 }
   0xc   :  { %3811 = sst [smem:[#allocation43_spill]] %s3763_s11 }
   0xd   :  { %3812 = sst [smem:[#allocation44_spill]] %s3764_s12 }
   0xe   :  { %3813 = sst [smem:[#allocation45_spill]] %s3765_s13 }
   0xf   :  { %3814 = sst [smem:[#allocation46_spill]] %s3766_s14 }
  0x10   :  { %3815 = sst [smem:[#allocation47_spill]] %s3768_s16 }
  0x11   :  { %3816 = sst [smem:[#allocation48_spill]] %s3770_s18 }
  0x12   :  { %3817 = sst [smem:[#allocation49_spill]] %s3771_s19 }
  0x13   :  { %3818 = sst [smem:[#allocation50_spill]] %s3772_s20 }
  0x14   :  { %26 = vsyncpa [#allocation3], 0 }
  0x15   :  { %28 = vsyncpa [#allocation3 + $0x1], 0 }
  0x16   :  { %29 = vsyncpa [#allocation6], 0 }
  0x17   :  { %30 = vsyncpa [#allocation9], 0 }
  0x18   :  { %31 = vsyncpa [#allocation12], 0 }
  0x19   :  { %32 = vsyncpa [#allocation15], 0 }
  0x1a   :  { %33 = vsyncpa [#allocation18], 0 }
  0x1b   :  { %34 = vsyncpa [#allocation4], 0 }
  0x1c   :  { %36 = vsyncpa [#allocation4 + $0x1], 0 }
  0x1d   :  { %37 = vsyncpa [#allocation22], 0  ;;  %s3038_s1 = smov 0   ;;  %s3040_s22 = smov 0  }
  0x1e   :  { %s3042_s23 = smov 0   ;;  %s3044_s24 = smov 0  }
  0x1f LB: > { %s2897_s2 = smov [#allocation5]   ;;  %s3059_s3 = sadd.s32 4294967295, %s2895_s24   ;;  %s2895_s24 = sphi %s3044_s24, %s3875_s24   ;;  %s2891_s23 = sphi %s3042_s23, %s3874_s23   ;;  %s2887_s22 = sphi %s3040_s22, %s3873_s22   ;;  %s2883_s1 = sphi %s3038_s1, %s3872_s1  }
  0x20   : > { %s514_s25 = sshll.u32 %s2897_s2, 4  ;;  %p1981_p0 = scmp.ge.s32.totalorder %s2895_s24, 1  ;;  %s3065_s25 = int_to_ptr.vmem [resolvable:$true] %s514_s25 }
  0x21   : > { %p3787_p1 = scmp.eq.s32.totalorder %s3059_s3, 0  ;;  %p499_p2 = scmp.lt.s32.totalorder %s2895_s24, 5 }
  0x22   : > { %s2898_s27 = smov [#allocation8]   ;;  %s2899_s29 = smov [#allocation11]  }
  0x23   : > { %p3067_p4 = pnand %p1981_p0, %p499_p2  ;;  %s541_s28 = sshll.u32 %s2898_s27, 4  ;;  %s3079_s28 = int_to_ptr.vmem [resolvable:$true] %s541_s28 }
  0x24   : > { %s572_s30 = sshll.u32 %s2899_s29, 4  ;;  %s3821_s2 = sld [smem:[#allocation34_spill]]  ;;  %s3081_s30 = int_to_ptr.vmem [resolvable:$true] %s572_s30 }
  0x25   : > { %s3819_s26 = scalar_select %p3067_p4, 1, 0 }
  0x26   : > { %p2271_p5 = pneg %p3067_p4 }
  0x28   : > { %p3075_p6 = pnand %p2271_p5, %p3787_p1 }
  0x2a   : > { %s2443_s18 = scalar_lea.hbm %s3821_s2, 256  ;;  %p3091_p8 = pneg %p3075_p6 }
  0x2b   : > { %p2444_p7 = scmp.ne.s32.totalorder %s3821_s2, %s2443_s18  ;;  %p2450_p11 = scmp.lt.u32.totalorder %s2443_s18, %s3821_s2 }
  0x2d   : > { %p2446_p9 = pnand %p3091_p8, %p2444_p7 }
  0x2f   : > { %p2447_p10 = pneg %p2446_p9 }
  0x31   : > { %p2452_p12 = pnand %p2450_p11, %p2447_p10 }
  0x33   : > { %2455 = shalt.err (!%p2452_p12)
}
  0x34   : > { %s2456_s19 = scalar_lea.vmem %s3065_s25, 256  ;;  %p2464_p5 = scmp.lt.s32.totalorder %s3065_s25, %s3065_s25 }
  0x35   : > { %p2457_p13 = scmp.ne.s32.totalorder %s3065_s25, %s2456_s19  ;;  %p2465_p3 = scmp.lt.s32.totalorder %s2456_s19, %s2456_s19 }
  0x37   : > { %p2459_p0 = pnand %p2457_p13, %p3091_p8  ;;  %p2466_p7 = por %p2465_p3, %p2464_p5 }
  0x39   : > { %p2460_p2 = pneg %p2459_p0 }
  0x3b   : > { %p2467_p9 = pnand %p2466_p7, %p2460_p2 }
  0x3d   : > { %2470 = shalt.err (!%p2467_p9)
}
  0x3e   : > { %s3786_s20 = smov 128   ;;  %s3789_s16 = smov 8  }
  0x3f   : > { %2274 = dma.hbm_to_vmem [thread:$0]  (!%p3075_p6), %s3821_s2, 256, %s3065_s25, [#allocation6], %s3786_s20, %s3786_s20, %s3789_s16  }
  0x40   : > { %s3823_s13 = sld [smem:[#allocation36_spill]] }
  0x46   : > { %s2471_s19 = scalar_lea.hbm %s3823_s13, 128 }
  0x47   : > { %p2472_p3 = scmp.ne.s32.totalorder %s3823_s13, %s2471_s19  ;;  %p2478_p12 = scmp.lt.u32.totalorder %s2471_s19, %s3823_s13 }
  0x49   : > { %p2474_p10 = pnand %p2472_p3, %p3091_p8 }
  0x4b   : > { %p2475_p11 = pneg %p2474_p10 }
  0x4d   : > { %p2480_p13 = pnand %p2478_p12, %p2475_p11 }
  0x4f   : > { %2483 = shalt.err (!%p2480_p13)
}
  0x50   : > { %s2484_s25 = scalar_lea.vmem %s3079_s28, 128  ;;  %p2492_p7 = scmp.lt.s32.totalorder %s3079_s28, %s3079_s28 }
  0x51   : > { %p2485_p0 = scmp.ne.s32.totalorder %s3079_s28, %s2484_s25  ;;  %p2493_p9 = scmp.lt.s32.totalorder %s2484_s25, %s2484_s25 }
  0x53   : > { %p2487_p2 = pnand %p2485_p0, %p3091_p8  ;;  %p2494_p3 = por %p2493_p9, %p2492_p7 }
  0x55   : > { %p2488_p5 = pneg %p2487_p2 }
  0x57   : > { %p2495_p10 = pnand %p2494_p3, %p2488_p5 }
  0x59   : > { %2498 = shalt.err (!%p2495_p10)
}
  0x5a   : > { %2280 = dma.hbm_to_vmem [thread:$0]  (!%p3075_p6), %s3823_s13, 128, %s3079_s28, [#allocation9]  }
  0x5b   : > { %s3824_s9 = sld [smem:[#allocation41_spill]] }
  0x61   : > { %s2499_s18 = scalar_lea.hbm %s3824_s9, 16 }
  0x62   : > { %p2500_p11 = scmp.ne.s32.totalorder %s3824_s9, %s2499_s18  ;;  %p2506_p0 = scmp.lt.u32.totalorder %s2499_s18, %s3824_s9 }
  0x64   : > { %p2502_p12 = pnand %p2500_p11, %p3091_p8 }
  0x66   : > { %p2503_p13 = pneg %p2502_p12 }
  0x68   : > { %p2508_p2 = pnand %p2506_p0, %p2503_p13 }
  0x6a   : > { %2511 = shalt.err (!%p2508_p2)
}
  0x6b   : > { %s2512_s28 = scalar_lea.vmem %s3081_s30, 16  ;;  %s2519_s25 = scalar_lea.vmem %s3081_s30, 32 }
  0x6c   : > { %p2513_p5 = scmp.ne.s32.totalorder %s3081_s30, %s2512_s28  ;;  %p2520_p3 = scmp.lt.s32.totalorder %s3081_s30, %s3081_s30 }
  0x6d   : > { %p2521_p10 = scmp.lt.s32.totalorder %s2519_s25, %s2512_s28 }
  0x6e   : > { %p2515_p7 = pnand %p2513_p5, %p3091_p8 }
  0x6f   : > { %p2522_p11 = por %p2521_p10, %p2520_p3 }
  0x70   : > { %p2516_p9 = pneg %p2515_p7 }
  0x72   : > { %p2523_p12 = pnand %p2522_p11, %p2516_p9 }
  0x74   : > { %2526 = shalt.err (!%p2523_p12)
}
  0x75   : > { %2286 = dma.hbm_to_vmem [thread:$0]  (!%p3075_p6), %s3824_s9, 16, %s3081_s30, [#allocation12]  }
  0x76   : > { %s2902_s8 = smov [#allocation14]   ;;  %s2903_s18 = smov [#allocation17]  }
  0x77   : > { %s597_s11 = sshll.u32 %s2902_s8, 4  ;;  %s624_s0 = sshll.u32 %s2903_s18, 4  ;;  %s598_s11 = int_to_ptr.vmem [resolvable:$true] %s597_s11  ;;  %s625_s0 = int_to_ptr.vmem [resolvable:$true] %s624_s0 }
  0x78   : > { %s3825_s12 = sld [smem:[#allocation44_spill]] }
  0x7e   : > { %s2527_s19 = scalar_lea.hbm %s3825_s12, 32 }
  0x7f   : > { %p2528_p13 = scmp.ne.s32.totalorder %s3825_s12, %s2527_s19  ;;  %p2534_p5 = scmp.lt.u32.totalorder %s2527_s19, %s3825_s12 }
  0x81   : > { %p2530_p0 = pnand %p2528_p13, %p3091_p8 }
  0x83   : > { %p2531_p2 = pneg %p2530_p0 }
  0x85   : > { %p2536_p7 = pnand %p2534_p5, %p2531_p2 }
  0x87   : > { %2539 = shalt.err (!%p2536_p7)
}
  0x88   : > { %s2540_s30 = scalar_lea.vmem %s598_s11, 32  ;;  %p2548_p11 = scmp.lt.s32.totalorder %s598_s11, %s598_s11 }
  0x89   : > { %p2541_p9 = scmp.ne.s32.totalorder %s598_s11, %s2540_s30  ;;  %p2549_p12 = scmp.lt.s32.totalorder %s2540_s30, %s2540_s30 }
  0x8b   : > { %p2543_p3 = pnand %p2541_p9, %p3091_p8  ;;  %p2550_p1 = por %p2549_p12, %p2548_p11 }
  0x8d   : > { %p2544_p10 = pneg %p2543_p3 }
  0x8f   : > { %p2551_p4 = pnand %p2550_p1, %p2544_p10 }
  0x91   : > { %2554 = shalt.err (!%p2551_p4)
}
  0x92   : > { %2292 = dma.hbm_to_vmem [thread:$0]  (!%p3075_p6), %s3825_s12, 32, %s598_s11, [#allocation15]  }
  0x93   : > { %s2555_s21 = scalar_lea.hbm %s3767_s15, 32 }
  0x94   : > { %p2556_p13 = scmp.ne.s32.totalorder %s3767_s15, %s2555_s21  ;;  %p2562_p4 = scmp.lt.u32.totalorder %s2555_s21, %s3767_s15 }
  0x96   : > { %p2558_p0 = pnand %p2556_p13, %p3091_p8 }
  0x98   : > { %p2559_p1 = pneg %p2558_p0 }
  0x9a   : > { %p2564_p2 = pnand %p2562_p4, %p2559_p1 }
  0x9c   : > { %2567 = shalt.err (!%p2564_p2)
}
  0x9d   : > { %s2568_s5 = scalar_lea.vmem %s625_s0, 32  ;;  %p2576_p3 = scmp.lt.s32.totalorder %s625_s0, %s625_s0 }
  0x9e   : > { %p2569_p5 = scmp.ne.s32.totalorder %s625_s0, %s2568_s5  ;;  %p2577_p10 = scmp.lt.s32.totalorder %s2568_s5, %s2568_s5 }
  0xa0   : > { %p2571_p7 = pnand %p2569_p5, %p3091_p8  ;;  %p2578_p11 = por %p2577_p10, %p2576_p3 }
  0xa2   : > { %p2572_p9 = pneg %p2571_p7 }
  0xa4   : > { %p2579_p12 = pnand %p2578_p11, %p2572_p9 }
  0xa6   : > { %2582 = shalt.err (!%p2579_p12)
}
  0xa7   : > { %2298 = dma.hbm_to_vmem [thread:$0]  (!%p3075_p6), %s3767_s15, 32, %s625_s0, [#allocation18]  }
  0xa8   : > { %s2904_s6 = smov [#allocation7]   ;;  %s2905_s20 = smov [#allocation10]  }
  0xa9   : > { %s527_s8 = sshll.u32 %s2904_s6, 4  ;;  %s558_s18 = sshll.u32 %s2905_s20, 4  ;;  %s528_s8 = int_to_ptr.vmem [resolvable:$true] %s527_s8  ;;  %s559_s18 = int_to_ptr.vmem [resolvable:$true] %s558_s18 }
  0xaa   : > { %s3826_s19 = sld [smem:[#allocation35_spill]] }
  0xb0   : > { %s2583_s28 = scalar_lea.hbm %s3826_s19, 1536 }
  0xb1   : > { %p2584_p13 = scmp.ne.s32.totalorder %s3826_s19, %s2583_s28  ;;  %p2590_p4 = scmp.lt.u32.totalorder %s2583_s28, %s3826_s19 }
  0xb3   : > { %p2586_p0 = pnand %p2584_p13, %p3091_p8 }
  0xb5   : > { %p2587_p1 = pneg %p2586_p0 }
  0xb7   : > { %p2592_p2 = pnand %p2590_p4, %p2587_p1 }
  0xb9   : > { %2595 = shalt.err (!%p2592_p2)
}
  0xba   : > { %s2596_s0 = scalar_lea.vmem %s528_s8, 1536  ;;  %p2604_p3 = scmp.lt.s32.totalorder %s528_s8, %s528_s8 }
  0xbb   : > { %p2597_p5 = scmp.ne.s32.totalorder %s528_s8, %s2596_s0  ;;  %p2605_p10 = scmp.lt.s32.totalorder %s2596_s0, %s2596_s0 }
  0xbd   : > { %p2599_p7 = pnand %p2597_p5, %p3091_p8  ;;  %p2606_p11 = por %p2605_p10, %p2604_p3 }
  0xbf   : > { %p2600_p9 = pneg %p2599_p7 }
  0xc1   : > { %p2607_p12 = pnand %p2606_p11, %p2600_p9 }
  0xc3   : > { %2610 = shalt.err (!%p2607_p12)
}
  0xc4   : > { %s3827_s30 = smov 8   ;;  %s3828_s6 = smov 128  }
  0xc5   : > { %2277 = dma.hbm_to_vmem [thread:$0]  (!%p3075_p6), %s3826_s19, 1536, %s528_s8, [#allocation6], %s3828_s6, %s3828_s6, %s3827_s30  }
  0xc6   : > { %s3829_s7 = sld [smem:[#allocation39_spill]] }
  0xcc   : > { %s2611_s28 = scalar_lea.hbm %s3829_s7, 128 }
  0xcd   : > { %p2612_p13 = scmp.ne.s32.totalorder %s3829_s7, %s2611_s28  ;;  %p2618_p4 = scmp.lt.u32.totalorder %s2611_s28, %s3829_s7 }
  0xcf   : > { %p2614_p0 = pnand %p2612_p13, %p3091_p8 }
  0xd1   : > { %p2615_p1 = pneg %p2614_p0 }
  0xd3   : > { %p2620_p2 = pnand %p2618_p4, %p2615_p1 }
  0xd5   : > { %2623 = shalt.err (!%p2620_p2)
}
  0xd6   : > { %s2624_s16 = scalar_lea.vmem %s559_s18, 128  ;;  %p2632_p3 = scmp.lt.s32.totalorder %s559_s18, %s559_s18 }
  0xd7   : > { %p2625_p5 = scmp.ne.s32.totalorder %s559_s18, %s2624_s16  ;;  %p2633_p10 = scmp.lt.s32.totalorder %s2624_s16, %s2624_s16 }
  0xd9   : > { %p2627_p7 = pnand %p2625_p5, %p3091_p8  ;;  %p2634_p11 = por %p2633_p10, %p2632_p3 }
  0xdb   : > { %p2628_p9 = pneg %p2627_p7 }
  0xdd   : > { %p2635_p12 = pnand %p2634_p11, %p2628_p9 }
  0xdf   : > { %2638 = shalt.err (!%p2635_p12)
}
  0xe0   : > { %2283 = dma.hbm_to_vmem [thread:$0]  (!%p3075_p6), %s3829_s7, 128, %s559_s18, [#allocation9]  }
  0xe1   : > { %s2906_s6 = smov [#allocation13]   ;;  %s2907_s21 = smov [#allocation16]  }
  0xe2   : > { %s583_s20 = sshll.u32 %s2906_s6, 4  ;;  %s610_s29 = sshll.u32 %s2907_s21, 4  ;;  %s584_s20 = int_to_ptr.vmem [resolvable:$true] %s583_s20  ;;  %s611_s29 = int_to_ptr.vmem [resolvable:$true] %s610_s29 }
  0xe3   : > { %s3830_s10 = sld [smem:[#allocation42_spill]] }
  0xe9   : > { %s2639_s5 = scalar_lea.hbm %s3830_s10, 256 }
  0xea   : > { %p2640_p13 = scmp.ne.s32.totalorder %s3830_s10, %s2639_s5  ;;  %p2646_p4 = scmp.lt.u32.totalorder %s2639_s5, %s3830_s10 }
  0xec   : > { %p2642_p0 = pnand %p2640_p13, %p3091_p8 }
  0xee   : > { %p2643_p1 = pneg %p2642_p0 }
  0xf0   : > { %p2648_p2 = pnand %p2646_p4, %p2643_p1 }
  0xf2   : > { %2651 = shalt.err (!%p2648_p2)
}
  0xf3   : > { %s2652_s18 = scalar_lea.vmem %s584_s20, 256  ;;  %p2660_p3 = scmp.lt.s32.totalorder %s584_s20, %s584_s20 }
  0xf4   : > { %p2653_p5 = scmp.ne.s32.totalorder %s584_s20, %s2652_s18  ;;  %p2661_p10 = scmp.lt.s32.totalorder %s2652_s18, %s2652_s18 }
  0xf6   : > { %p2655_p7 = pnand %p2653_p5, %p3091_p8  ;;  %p2662_p11 = por %p2661_p10, %p2660_p3 }
  0xf8   : > { %p2656_p9 = pneg %p2655_p7 }
  0xfa   : > { %p2663_p12 = pnand %p2662_p11, %p2656_p9 }
  0xfc   : > { %2666 = shalt.err (!%p2663_p12)
}
  0xfd   : > { %2289 = dma.hbm_to_vmem [thread:$0]  (!%p3075_p6), %s3830_s10, 256, %s584_s20, [#allocation12]  }
  0xfe   : > { %s3831_s14 = sld [smem:[#allocation46_spill]] }
 0x104   : > { %s2667_s25 = scalar_lea.hbm %s3831_s14, 2048 }
 0x105   : > { %p2668_p13 = scmp.ne.s32.totalorder %s3831_s14, %s2667_s25  ;;  %p2674_p4 = scmp.lt.u32.totalorder %s2667_s25, %s3831_s14 }
 0x107   : > { %p2670_p0 = pnand %p2668_p13, %p3091_p8 }
 0x109   : > { %p2671_p1 = pneg %p2670_p0 }
 0x10b   : > { %p2676_p2 = pnand %p2674_p4, %p2671_p1 }
 0x10d   : > { %2679 = shalt.err (!%p2676_p2)
}
 0x10e   : > { %s2680_s8 = scalar_lea.vmem %s611_s29, 2048  ;;  %p2688_p3 = scmp.lt.s32.totalorder %s611_s29, %s611_s29 }
 0x10f   : > { %p2681_p5 = scmp.ne.s32.totalorder %s611_s29, %s2680_s8  ;;  %p2689_p10 = scmp.lt.s32.totalorder %s2680_s8, %s2680_s8 }
 0x111   : > { %p2683_p7 = pnand %p2681_p5, %p3091_p8  ;;  %p2690_p11 = por %p2689_p10, %p2688_p3 }
 0x113   : > { %p2684_p9 = pneg %p2683_p7 }
 0x115   : > { %p2691_p12 = pnand %p2690_p11, %p2684_p9 }
 0x117   : > { %2694 = shalt.err (!%p2691_p12)
}
 0x118   : > { %s2908_s20 = smov 256   ;;  %s2909_s18 = smov 16  }
 0x119   : > { %2295 = dma.hbm_to_vmem [thread:$0]  (!%p3075_p6), %s3831_s14, 2048, %s611_s29, [#allocation15], %s2908_s20, %s2908_s20, %s2909_s18  }
 0x11a   : > { %s2910_s21 = smov [#allocation19]   ;;  %s2695_s11 = scalar_lea.hbm %s3769_s17, 16 }
 0x11b   : > { %s638_s28 = sshll.u32 %s2910_s21, 4  ;;  %p2696_p13 = scmp.ne.s32.totalorder %s3769_s17, %s2695_s11  ;;  %s639_s28 = int_to_ptr.vmem [resolvable:$true] %s638_s28 }
 0x11c   : > { %p2702_p4 = scmp.lt.u32.totalorder %s2695_s11, %s3769_s17 }
 0x11d   : > { %p2698_p0 = pnand %p2696_p13, %p3091_p8 }
 0x11f   : > { %p2699_p1 = pneg %p2698_p0 }
 0x121   : > { %p2704_p2 = pnand %p2702_p4, %p2699_p1 }
 0x123   : > { %2707 = shalt.err (!%p2704_p2)
}
 0x124   : > { %s2708_s29 = scalar_lea.vmem %s639_s28, 16  ;;  %s2715_s20 = scalar_lea.vmem %s639_s28, 32 }
 0x125   : > { %p2709_p5 = scmp.ne.s32.totalorder %s639_s28, %s2708_s29  ;;  %p2716_p3 = scmp.lt.s32.totalorder %s639_s28, %s639_s28 }
 0x126   : > { %p2717_p10 = scmp.lt.s32.totalorder %s2715_s20, %s2708_s29 }
 0x127   : > { %p2711_p7 = pnand %p2709_p5, %p3091_p8 }
 0x128   : > { %p2718_p11 = por %p2717_p10, %p2716_p3 }
 0x129   : > { %p2712_p9 = pneg %p2711_p7 }
 0x12b   : > { %p2719_p12 = pnand %p2718_p11, %p2712_p9 }
 0x12d   : > { %2722 = shalt.err (!%p2719_p12)
}
 0x12e   : > { %2301 = dma.hbm_to_vmem [thread:$0]  (!%p3075_p6), %s3769_s17, 16, %s639_s28, [#allocation18]  }
 0x12f   : > { %s1980_s4 = sadd.s32 4294967294, %s2895_s24   ;;  %s3293_s2 = sadd.s32 1, %s2895_s24  }
 0x130   : > { %s47_s27 = ssub.s32 %s2895_s24, %s3293_s2  ;;  %s50_s6 = sadd.s32 1, %s2891_s23 }
 0x131   : > { %p48_p8 = scmp.eq.s32.totalorder %s47_s27, 0  ;;  %p57_p13 = scmp.ne.s32.totalorder %s2891_s23, %s2887_s22 }
 0x132   : > { %p58_p0 = scmp.eq.s32.totalorder %s2895_s24, 0  ;;  %p63_p1 = scmp.ne.s32.totalorder %s2887_s22, %s2883_s1 }
 0x133   : > { %s3304_s21 = scalar_select %p48_p8, %s2891_s23, %s50_s6  }
 0x134   : > { %p3306_p4 = por %p58_p0, %p57_p13  ;;  %p3833_p2 = scmp.eq.s32.totalorder %s3059_s3, 0 }
 0x135   : > { %p3791_p5 = scmp.eq.s32.totalorder %s3059_s3, 3  ;;  %p450_p7 = scmp.eq.s32.totalorder %s1980_s4, 3 }
 0x136   : > { %p3312_p6 = por %p3833_p2, %p63_p1  ;;  %p2320_p9 = scmp.lt.s32.totalorder %s2895_s24, 4 }
 0x137   : > { %s649_s5 = sand.u32 1, %s2891_s23   ;;  %p3321_p3 = por %p3791_p5, %p57_p13 }
 0x138   : > { %p3325_p10 = por %p450_p7, %p63_p1  ;;  %s1993_s16 = sshll.u32 %s649_s5, 3 }
 0x139   : > { %s3835_s11 = scalar_select %p3321_p3, 1, 0 }
 0x13a   : > { %s3836_s0 = scalar_select %p3325_p10, 1, 0 }
 0x13b   : > { %s1994_s8 = sshll.u32 %s2895_s24, 7  ;;  %s3837_s18 = sld [smem:[#allocation32_spill]] }
 0x13c   : > { %s653_s4 = scalar_lea.vmem [#allocation2], %s1993_s16  ;;  %p3339_p11 = pnand %p2320_p9, %p3306_p4 }
 0x13d   : > { %s660_s27 = sshll.u32 %s653_s4, 4  ;;  %s650_s7 = scalar_lea.sflag [#allocation3], %s649_s5  ;;  %s3335_s27 = int_to_ptr.vmem [resolvable:$true] %s660_s27 }
 0x13e   : > { %p2725_p8 = pneg %p3339_p11 }
 0x141   : > { %s3333_s30 = scalar_lea.hbm %s3837_s18, %s1994_s8  ;;  %s2728_s29 = scalar_lea.hbm %s3837_s18, 512 }
 0x142   : > { %s2723_s9 = scalar_lea.hbm %s3333_s30, 128  ;;  %p2729_p1 = scmp.lt.u32.totalorder %s3333_s30, %s3837_s18 }
 0x143   : > { %p2724_p12 = scmp.ne.s32.totalorder %s3333_s30, %s2723_s9  ;;  %p2730_p4 = scmp.lt.u32.totalorder %s2728_s29, %s2723_s9 }
 0x144   : > { %p2732_p7 = scmp.lt.u32.totalorder %s2723_s9, %s3333_s30 }
 0x145   : > { %p2726_p13 = pnand %p2725_p8, %p2724_p12  ;;  %p2731_p2 = por %p2730_p4, %p2729_p1 }
 0x147   : > { %p2727_p0 = pneg %p2726_p13  ;;  %p2733_p9 = por %p2732_p7, %p2731_p2 }
 0x149   : > { %p2734_p5 = pnand %p2733_p9, %p2727_p0 }
 0x14b   : > { %2737 = shalt.err (!%p2734_p5)
}
 0x14c   : > { %s2738_s5 = scalar_lea.vmem %s3335_s27, 128  ;;  %s2911_s4 = smov [#allocation2]  }
 0x14d   : > { %p2739_p12 = scmp.ne.s32.totalorder %s3335_s27, %s2738_s5  ;;  %s2743_s16 = sshll.u32 %s2911_s4, 4  ;;  %s2744_s16 = int_to_ptr.vmem [resolvable:$false] %s2743_s16 }
 0x14e   : > { %s2745_s8 = scalar_lea.vmem %s2744_s16, 256  ;;  %p2746_p3 = scmp.lt.s32.totalorder %s3335_s27, %s2744_s16 }
 0x14f   : > { %p2741_p13 = pnand %p2739_p12, %p2725_p8  ;;  %p2747_p1 = scmp.lt.s32.totalorder %s2745_s8, %s2738_s5 }
 0x151   : > { %p2742_p10 = pneg %p2741_p13  ;;  %p2748_p4 = por %p2747_p1, %p2746_p3 }
 0x153   : > { %p2749_p2 = pnand %p2748_p4, %p2742_p10 }
 0x155   : > { %2752 = shalt.err (!%p2749_p2)
}
 0x156   : > { %2305 = dma.hbm_to_vmem [thread:$0]  (!%p3339_p11), %s3333_s30, 128, %s3335_s27, %s650_s7  }
 0x157   : > { %p3839_p5 = scmp.ne.s32.totalorder %s3819_s26, 0 }
 0x158   : > { %s3371_s9 = sand.u32 (!%p3839_p5), 1, %s2887_s22  }
 0x159   : > { %669 = sbr.rel (%p3839_p5) target bundleno = 2740 (0xab4), region = 92  ;;  %s1996_s29 = sshll.u32 (!%p3839_p5), %s3371_s9, 3 }
 0x15a   : > { %s672_s25 = scalar_lea.sflag (!%p3839_p5), [#allocation3], %s3371_s9  ;;  %s3375_s20 = scalar_lea.vmem (!%p3839_p5), [#allocation2], %s1996_s29 }
 0x160   : > { %2850 = dma.done.wait (%p3312_p6), %s672_s25, 128  }
 0x161   : > { %2852 = vsyncadd (%p3312_p6), %s672_s25, 4294967168  ;;  %p3840_p3 = scmp.eq.s32.totalorder %s3059_s3, 0 }
 0x163   : > { %2854 = dma.done.wait (%p3840_p3), [#allocation6], 1792   ;;  %p3841_p10 = pmov %p3840_p3 }
 0x164   : > { %p3842_p11 = pmov %p3840_p3 }
 0x165   : > { %2856 = vsyncadd (%p3841_p10), [#allocation6], 4294965504 }
 0x166   : > { %2858 = dma.done.wait (%p3842_p11), [#allocation9], 256   ;;  %p3843_p8 = pmov %p3840_p3 }
 0x167   : > { %p3844_p0 = pmov %p3840_p3 }
 0x168   : > { %2860 = vsyncadd (%p3843_p8), [#allocation9], 4294967040 }
 0x169   : > { %2862 = dma.done.wait (%p3844_p0), [#allocation12], 272   ;;  %p3845_p7 = pmov %p3844_p0 }
 0x16a   : > { %p3846_p6 = pmov %p3844_p0 }
 0x16b   : > { %2864 = vsyncadd (%p3845_p7), [#allocation12], 4294967024 }
 0x16c   : > { %2866 = dma.done.wait (%p3846_p6), [#allocation15], 2080   ;;  %p3847_p9 = pmov %p3844_p0 }
 0x16d   : > { %p3848_p12 = pmov %p3844_p0 }
 0x16e   : > { %2868 = vsyncadd (%p3847_p9), [#allocation15], 4294965216 }
 0x16f   : > { %2870 = dma.done.wait (%p3848_p12), [#allocation18], 48   ;;  %p3849_p13 = pmov %p3844_p0 }
 0x170   : > { %s3401_s7 = scalar_lea.vmem [#allocation20], %s1996_s29  ;;  %p3850_p1 = scmp.ne.s32.totalorder %s3059_s3, 0 }
 0x171   : > { %2872 = vsyncadd (%p3849_p13), [#allocation18], 4294967248  ;;  %s3851_s30 = sld [smem:[#allocation33_spill]] (!%p3850_p1)  ;;  %vm778_vm0 = vcmask (!%p3850_p1), 523264   ;;  %v781_v2 = vld [vmem:[#allocation5] sm:$0xff] (!%p3850_p1)  ;;  %v782_v3 = vld [vmem:[#allocation5 + $0x8] sm:$0xff] (!%p3850_p1) }
 0x172   : > { %775 = sbr.rel (%p3850_p1) target bundleno = 377 (0x179), region = 140  ;;  %783 = vst.msk [vmem:[#allocation23] sm:$0xff] (!%p3850_p1), %vm778_vm0, %v781_v2  ;;  %784 = vst.msk [vmem:[#allocation23 + $0x8] sm:$0xff] (!%p3850_p1), %vm778_vm0, %v782_v3 }
 0x177   : > { %v776_v0 = vld [vmem:[%s3851_s30] sm:$0xff] (!%p3850_p1)  ;;  %v777_v1 = vld [vmem:[%s3851_s30 + $0x8] sm:$0xff] (!%p3850_p1) }
 0x178   : > { %779 = vst.msk [vmem:[#allocation21] sm:$0xff] (!%p3850_p1), %vm778_vm0, %v776_v0  ;;  %780 = vst.msk [vmem:[#allocation21 + $0x8] sm:$0xff] (!%p3850_p1), %vm778_vm0, %v777_v1 }
 0x179 PF: > { %s3852_s16 = sld [smem:[#allocation37_spill]]  ;;  %v2912_v7 = vmov 0.0|0.0   ;;  %v2913_v10 = vmov 0.0   ;;  %vm870_vm1 = vcmask 64512   ;;  %v787_v11 = vld [vmem:[#allocation8] sm:$0xff]  ;;  %vm2914_vm2 = vmmov 0  }
 0x17a   : > { %2131 = vmatprep.subr.bf16.mxu0 %v2912_v7  ;;  %2083 = vmatprep.subr.mxu1 %v2913_v10  ;;  %v3430_v13 = vld [vmem:[%s3375_s20] sm:$0xff]  ;;  %vm796_vm3 = vcmask 523264   ;;  %s3853_s6 = sld [smem:[#allocation38_spill]]  ;;  %vm952_vm4 = vcmask 97280   ;;  %v2915_v34 = vmov 2   ;;  %v2916_v35 = vmov 0  }
 0x17b   : > { %2085 = vmatprep.mubr.msk.f32.mxu1 %vm2914_vm2, %v2913_v10  ;;  %2080 = vmatprep.mubr.msk.f32.mxu0 %vm2914_vm2, %v2913_v10  ;;  %v2917_v39 = vmov 1   ;;  %v2918_v40 = vmov 11   ;;  %v2919_v41 = vmov 3   ;;  %v2920_v42 = vmov 4   ;;  %s3854_s8 = sld [smem:[#allocation40_spill]]  ;;  %v1048_v61 = vld [vmem:[#allocation10] sm:$0xff] }
 0x17c   : > { %2084 = vmatpush3.msra.mxu1 %v787_v11  ;;  %2404 = vset.pattern.permute.xlu0 %v2915_v34  ;;  %v2921_v43 = vmov 5   ;;  %v2922_v44 = vmov 6   ;;  %v2923_v45 = vmov 7   ;;  %v2924_v46 = vmov 8   ;;  %s3855_s5 = sld [smem:[#allocation43_spill]]  ;;  %s3794_s10 = smov 64  }
 0x17d   : > { %2086 = vmatmul.mubr.msk.f32.vlgmr.msra.gmra.mrb[0].mxu1 %vm870_vm1, %v3430_v13  ;;  %2143 = vmatprep.subr.bf16.mxu1 %v2912_v7  ;;  %v2925_v50 = vmov 9   ;;  %v2926_v54 = vmov 10   ;;  %s3857_s28 = smov 64   ;;  %s3858_s4 = sld [smem:[#allocation47_spill]] }
 0x17e   : > { %2104 = vmatprep.mubr.msk.f32.mxu1 %vm2914_vm2, %v2913_v10  ;;  %2402 = vset.pattern.permute.xlu1 %v2916_v35  ;;  %p3859_p2 = scmp.eq.s32.totalorder %s3059_s3, 3 }
 0x17f   : > { %v788_v4 = vld [vmem:[%s3852_s16] sm:$0xff]  ;;  %v789_v5 = vld [vmem:[%s3852_s16 + $0x8] sm:$0xff]  ;;  %v790_v6 = vld [vmem:[%s3852_s16 + $0x10] sm:$0xff] }
 0x180   : > { %v2132_v8 = vpack.c.bf16 %v789_v5, %v788_v4  ;;  %v791_v9 = vld [vmem:[%s3852_s16 + $0x18] sm:$0xff]  ;;  %v792_v14 = vld [vmem:[%s3852_s16 + $0x20] sm:$0xff]  ;;  %v793_v15 = vld [vmem:[%s3852_s16 + $0x28] sm:$0xff] }
 0x181   : > { %v2135_v12 = vpack.c.bf16 %v791_v9, %v790_v6  ;;  %v2138_v16 = vpack.c.bf16 %v793_v15, %v792_v14  ;;  %v794_v17 = vld [vmem:[%s3852_s16 + $0x30] sm:$0xff]  ;;  %v795_v18 = vld [vmem:[%s3852_s16 + $0x38] sm:$0xff]  ;;  %v2011_v24 = vld [vmem:[%s3853_s6] ss:$0 sm:$0xff] }
 0x182   : > { %2133 = vmatpush3.bf16.msra.mxu0 %v2132_v8  ;;  %v2141_v19 = vpack.c.bf16 %v795_v18, %v794_v17  ;;  %v3452_v20 = vld [vmem:[#allocation21] sm:$0xff]  ;;  %v1049_v47 = vld [vmem:[%s3854_s8] sm:$0xff]  ;;  %v1050_v48 = vld [vmem:[%s3854_s8 + $0x8] sm:$0xff] }
 0x183   : > { %2134 = vmatprep.subr.bf16.mxu0 %v2912_v7  ;;  %v2144_v49 = vpack.c.bf16 %v1050_v48, %v1049_v47  ;;  %v1051_v51 = vld [vmem:[%s3854_s8 + $0x10] sm:$0xff]  ;;  %v1052_v52 = vld [vmem:[%s3854_s8 + $0x18] sm:$0xff]  ;;  %v1053_v55 = vld [vmem:[%s3854_s8 + $0x20] sm:$0xff] }
 0x184   : > { %v2147_v53 = vpack.c.bf16 %v1052_v52, %v1051_v51  ;;  %v1054_v56 = vld [vmem:[%s3854_s8 + $0x28] sm:$0xff]  ;;  %v1055_v58 = vld [vmem:[%s3854_s8 + $0x30] sm:$0xff]  ;;  %v1056_v59 = vld [vmem:[%s3854_s8 + $0x38] sm:$0xff]  ;;  %s3856_s8 = sld [smem:[#allocation45_spill]] }
 0x185   : > { %2145 = vmatpush3.bf16.msra.mxu1 %v2144_v49  ;;  %v2150_v57 = vpack.c.bf16 %v1054_v56, %v1053_v55  ;;  %v2153_v60 = vpack.c.bf16 %v1056_v59, %v1055_v58  ;;  %v1212_v62 = vld [vmem:[%s3855_s5 + $0x8] sm:$0xff]  ;;  %v1214_v63 = vld [vmem:[%s3855_s5 + $0x18] sm:$0xff]  ;;  %v964_v8 = vld [vmem:[#allocation7] sm:$0xff] }
 0x186   : > { %2136 = vmatpush3.bf16.msra.mxu0 %v2135_v12  ;;  %2146 = vmatprep.subr.bf16.mxu1 %v2912_v7  ;;  %v2155_v0 = vpack.c.bf16 %v1214_v63, %v1212_v62  ;;  %v965_v6 = vld [vmem:[#allocation7 + $0x8] sm:$0xff]  ;;  %v1211_v47 = vld [vmem:[%s3855_s5] sm:$0xff]  ;;  %v1213_v48 = vld [vmem:[%s3855_s5 + $0x10] sm:$0xff] }
 0x187   : > { %2137 = vmatprep.subr.bf16.mxu0 %v2912_v7  ;;  %v1218_v51 = vld [vmem:[%s3855_s5 + $0x38] sm:$0xff]  ;;  %v1217_v58 = vld [vmem:[%s3855_s5 + $0x30] sm:$0xff]  ;;  %v1220_v59 = vld [vmem:[%s3855_s5 + $0x48] sm:$0xff] }
 0x188   : > { %v1219_v63 = vld [vmem:[%s3855_s5 + $0x40] sm:$0xff] }
 0x189   : > { %2148 = vmatpush3.bf16.msra.mxu1 %v2147_v53 }
 0x18a   : > { %2139 = vmatpush3.bf16.msra.mxu0 %v2138_v16  ;;  %2149 = vmatprep.subr.bf16.mxu1 %v2912_v7  ;;  %v967_v16 = vld [vmem:[#allocation7 + $0x18] sm:$0xff] }
 0x18b   : > { %2140 = vmatprep.subr.bf16.mxu0 %v2912_v7 }
 0x18d   : > { %2151 = vmatpush3.bf16.msra.mxu1 %v2150_v57  ;;  %v1215_v57 = vld [vmem:[%s3855_s5 + $0x20] sm:$0xff] }
 0x18e   : > { %2142 = vmatpush3.bf16.msra.mxu0 %v2141_v19  ;;  %2152 = vmatprep.subr.bf16.mxu1 %v2912_v7  ;;  %v968_v19 = vld [vmem:[#allocation7 + $0x20] sm:$0xff] }
 0x18f   : > { %2107 = vmatprep.subr.mxu0 %v2913_v10 }
 0x191   : > { %2081 = vmatmul.mubr.msk.f32.vlgmr.msra.gmra.mrb[0].mxu0 %vm796_vm3, %v3452_v20  ;;  %2154 = vmatpush3.bf16.msra.mxu1 %v2153_v60  ;;  %v1222_v60 = vld [vmem:[%s3855_s5 + $0x58] sm:$0xff] }
 0x192   : > { %2109 = vmatprep.mubr.msk.f32.mxu0 %vm2914_vm2, %v2913_v10  ;;  %2108 = vmatpush3.msra.mxu0 %v1048_v61  ;;  %v2161_v61 = vpack.c.bf16 %v1217_v58, %v1215_v57  ;;  %v2163_v62 = vpack.c.bf16 %v1222_v60, %v1220_v59  ;;  %v1452_v57 = vld [vmem:[#allocation16 + $0x78] sm:$0xff]  ;;  %v1449_v60 = vld [vmem:[#allocation16 + $0x60] sm:$0xff] }
 0x193   : > { %2156 = vmatprep.subr.bf16.mxu1 %v2155_v0  ;;  %v1221_v0 = vld [vmem:[%s3855_s5 + $0x50] sm:$0xff] }
 0x195   : > { %2110 = vmatmul.mubr.msk.f32.vlgmr.msra.gmra.mrb[2].mxu0 %vm870_vm1, %v3430_v13  ;;  %v966_v13 = vld [vmem:[#allocation7 + $0x10] sm:$0xff] }
 0x196   : > { %1525 = vmatprep.mubr.f32.mxu0 %v2913_v10 }
 0x250   : > { %v940_v21 = vpop.f32.mrb[0].mxu1 }
 0x251   : > { %v2087_v22 = vpop.f32.mrb[1].mxu1 }
 0x264   : > { %v866_v23 = vpop.f32.mrb[0].mxu0 }
 0x265   : > { %v941_v25 = vadd.f32 %v940_v21, %v866_v23  ;;  %v2082_v26 = vpop.f32.mrb[1].mxu0  ;;  %v969_v23 = vld [vmem:[#allocation7 + $0x28] sm:$0xff] }
 0x266   : > { %v970_v26 = vld [vmem:[#allocation7 + $0x30] sm:$0xff] }
 0x267   : > { %v951_v27 = vadd.f32 %v2011_v24, %v941_v25 }
 0x269   : > { %v953_v28 = vsel %vm952_vm4, %v951_v27, -inf }
 0x26a   : > { %954 = vmax.xlane.f32.xlu0 %v953_v28 }
 0x2f7   : > { %v955_v29 = vpop.xlane.xlu0 %954 }
 0x2f8   : > { %v956_v30 = vsub.f32 %v951_v27, %v955_v29  ;;  %v971_v29 = vld [vmem:[#allocation7 + $0x38] sm:$0xff] }
 0x2fa   : > { %v957_v31 = vmul.f32 1.442695, %v956_v30 }
 0x2fc   : > { %2415 = vpow2.f32 %v957_v31 }
 0x306   : > { %v2416_v32 = vpop.eup %2415 }
 0x307   : > { %v959_v33 = vsel %vm952_vm4, %v2416_v32, 0.0 }
 0x308   : > { %960 = vadd.xlane.f32.xlu0 %v959_v33 }
 0x395   : > { %v961_v36 = vpop.xlane.xlu0 %960 }
 0x396   : > { %2417 = vrcp.f32 %v961_v36  ;;  %v973_v36 = vld [vmem:[#allocation7 + $0x48] sm:$0xff] }
 0x3a0   : > { %v2418_v37 = vpop.eup %2417 }
 0x3a1   : > { %v963_v38 = vmul.f32 %v2418_v37, %v2416_v32  ;;  %v972_v32 = vld [vmem:[#allocation7 + $0x40] sm:$0xff] }
 0x3a3   : > { %989 = vperm.xlu0 %2404, %v963_v38   ;;  %978 = vperm.xlu1 %2402, %v963_v38  }
 0x3a7   : > { %2403 = vset.pattern.permute.xlu1 %v2917_v39  ;;  %2414 = vset.pattern.permute.xlu0 %v2918_v40  ;;  %v974_v39 = vld [vmem:[#allocation7 + $0x50] sm:$0xff] }
 0x3a8   : > { %983 = vperm.xlu1 %2403, %v963_v38  }
 0x3ac   : > { %2405 = vset.pattern.permute.xlu1 %v2919_v41 }
 0x3ad   : > { %995 = vperm.xlu1 %2405, %v963_v38  }
 0x3b1   : > { %2406 = vset.pattern.permute.xlu1 %v2920_v42 }
 0x3b2   : > { %1001 = vperm.xlu1 %2406, %v963_v38  }
 0x3b6   : > { %2407 = vset.pattern.permute.xlu1 %v2921_v43 }
 0x3b7   : > { %1007 = vperm.xlu1 %2407, %v963_v38  }
 0x3bb   : > { %2408 = vset.pattern.permute.xlu1 %v2922_v44 }
 0x3bc   : > { %1013 = vperm.xlu1 %2408, %v963_v38  }
 0x3c0   : > { %2409 = vset.pattern.permute.xlu1 %v2923_v45  ;;  %v975_v45 = vld [vmem:[#allocation7 + $0x58] sm:$0xff] }
 0x3c1   : > { %1019 = vperm.xlu1 %2409, %v963_v38  }
 0x3c5   : > { %2410 = vset.pattern.permute.xlu1 %v2924_v46 }
 0x3c6   : > { %1025 = vperm.xlu1 %2410, %v963_v38  }
 0x3ca   : > { %2411 = vset.pattern.permute.xlu1 %v2925_v50  ;;  %v1216_v50 = vld [vmem:[%s3855_s5 + $0x28] sm:$0xff] }
 0x3cb   : > { %1031 = vperm.xlu1 %2411, %v963_v38   ;;  %v2159_v56 = vpack.c.bf16 %v1218_v51, %v1216_v50  ;;  %v1446_v50 = vld [vmem:[#allocation16 + $0x48] sm:$0xff]  ;;  %v1448_v51 = vld [vmem:[#allocation16 + $0x58] sm:$0xff] }
 0x3cf   : > { %2412 = vset.pattern.permute.xlu1 %v2926_v54  ;;  %v2157_v54 = vpack.c.bf16 %v1213_v48, %v1211_v47  ;;  %v1441_v48 = vld [vmem:[#allocation16 + $0x20] sm:$0xff] }
 0x3d0   : > { %1037 = vperm.xlu1 %2412, %v963_v38  }
 0x3d4   : > { %2413 = vset.pattern.permute.xlu1 %v2918_v40 }
 0x3d5   : > { %1043 = vperm.xlu1 %2413, %v963_v38  }
 0x422   : > { %v979_v1 = vpop.permute.xlu1 %978  ;;  %v990_v14 = vpop.permute.xlu0 %989 }
 0x423   : > { %v981_v12 = vmul.f32 %v979_v1, %v964_v8  ;;  %v992_v18 = vmul.f32 %v990_v14, %v966_v13  ;;  %v1224_v1 = vld [vmem:[%s3855_s5 + $0x68] sm:$0xff] }
 0x427   : > { %v984_v2 = vpop.permute.xlu1 %983 }
 0x428   : > { %v986_v9 = vmul.f32 %v984_v2, %v965_v6  ;;  %v1226_v2 = vld [vmem:[%s3855_s5 + $0x78] sm:$0xff]  ;;  %v1225_v6 = vld [vmem:[%s3855_s5 + $0x70] sm:$0xff] }
 0x42a   : > { %v987_v15 = vadd.f32 %v986_v9, %v981_v12  ;;  %v1210_v9 = vld [vmem:[#allocation13 + $0x8] sm:$0xff]  ;;  %v1196_v12 = vpop.f32.mrb[2].mxu0 }
 0x42b   : > { %v2111_v13 = vpop.f32.mrb[3].mxu0 }
 0x42c   : > { %v996_v3 = vpop.permute.xlu1 %995  ;;  %v993_v21 = vadd.f32 %v992_v18, %v987_v15  ;;  %v2014_v15 = vld [vmem:[#allocation11] ss:$0 sm:$0xff]  ;;  %v1430_v13 = vld [vmem:[%s3856_s8 + $0x48] sm:$0xff] }
 0x42d   : > { %v998_v22 = vmul.f32 %v996_v3, %v967_v16  ;;  %v2165_v3 = vpack.c.bf16 %v1221_v0, %v1219_v63  ;;  %v1424_v63 = vld [vmem:[%s3856_s8 + $0x18] sm:$0xff] }
 0x42f   : > { %v999_v27 = vadd.f32 %v998_v22, %v993_v21  ;;  %v1375_v21 = vlaneseq }
 0x431   : > { %v1002_v4 = vpop.permute.xlu1 %1001 }
 0x432   : > { %v1004_v24 = vmul.f32 %v1002_v4, %v968_v19  ;;  %v2167_v4 = vpack.c.bf16 %v1226_v2, %v1224_v1  ;;  %v1421_v2 = vld [vmem:[%s3856_s8] sm:$0xff] }
 0x434   : > { %v1005_v30 = vadd.f32 %v1004_v24, %v999_v27 }
 0x436   : > { %v1008_v5 = vpop.permute.xlu1 %1007 }
 0x437   : > { %v1010_v28 = vmul.f32 %v1008_v5, %v969_v23  ;;  %v1223_v5 = vld [vmem:[%s3855_s5 + $0x60] sm:$0xff] }
 0x438   : > { %v2169_v8 = vpack.c.bf16 %v1225_v6, %v1223_v5  ;;  %v1227_v23 = vld [vmem:[#allocation14] sm:$0x3]  ;;  %v1428_v5 = vld [vmem:[%s3856_s8 + $0x38] sm:$0xff] }
 0x439   : > { %v1011_v34 = vadd.f32 %v1010_v28, %v1005_v30  ;;  %v1455_v6 = vld [vmem:[#allocation21 + $0x8] sm:$0xff] }
 0x43b   : > { %v1014_v11 = vpop.permute.xlu1 %1013 }
 0x43c   : > { %v1016_v31 = vmul.f32 %v1014_v11, %v970_v26  ;;  %v1209_v11 = vld [vmem:[#allocation13] sm:$0xff] }
 0x43e   : > { %v1017_v37 = vadd.f32 %v1016_v31, %v1011_v34 }
 0x440   : > { %v1020_v17 = vpop.permute.xlu1 %1019 }
 0x441   : > { %v1022_v35 = vmul.f32 %v1020_v17, %v971_v29 }
 0x443   : > { %v1023_v40 = vadd.f32 %v1022_v35, %v1017_v37 }
 0x445   : > { %v1026_v25 = vpop.permute.xlu1 %1025 }
 0x446   : > { %v1028_v38 = vmul.f32 %v1026_v25, %v972_v32  ;;  %v1228_v32 = vld [vmem:[#allocation23] sm:$0xff] }
 0x448   : > { %v1029_v43 = vadd.f32 %v1028_v38, %v1023_v40  ;;  %v1440_v40 = vld [vmem:[#allocation16 + $0x18] sm:$0xff] }
 0x44a   : > { %v1032_v33 = vpop.permute.xlu1 %1031 }
 0x44b   : > { %v1034_v41 = vmul.f32 %v1032_v33, %v973_v36 }
 0x44d   : > { %v1035_v46 = vadd.f32 %v1034_v41, %v1029_v43  ;;  %v1437_v41 = vld [vmem:[#allocation16] sm:$0xff]  ;;  %v1439_v43 = vld [vmem:[#allocation16 + $0x10] sm:$0xff] }
 0x44f   : > { %v1038_v42 = vpop.permute.xlu1 %1037 }
 0x450   : > { %v1040_v44 = vmul.f32 %v1038_v42, %v974_v39  ;;  %v1438_v39 = vld [vmem:[#allocation16 + $0x8] sm:$0xff] }
 0x451   : > { %v2171_v42 = vpack.c.bf16 %v1440_v40, %v1438_v39 }
 0x452   : > { %v1041_v52 = vadd.f32 %v1040_v44, %v1035_v46  ;;  %v1442_v44 = vld [vmem:[#allocation16 + $0x28] sm:$0xff]  ;;  %v2173_v46 = vpack.c.bf16 %v1439_v43, %v1437_v41 }
 0x453   : > { %2172 = vmatprep.subr.bf16.mxu0 %v2171_v42 }
 0x454   : > { %v1044_v49 = vpop.permute.xlu1 %1043  ;;  %2174 = vmatpush1.bf16.msra.mxu0 %v2173_v46 }
 0x455   : > { %v1046_v53 = vmul.f32 %v1044_v49, %v975_v45  ;;  %v1444_v45 = vld [vmem:[#allocation16 + $0x38] sm:$0xff]  ;;  %v1443_v49 = vld [vmem:[#allocation16 + $0x30] sm:$0xff] }
 0x456   : > { %v2175_v47 = vpack.c.bf16 %v1444_v45, %v1442_v44 }
 0x457   : > { %v1047_v55 = vadd.f32 %v1046_v53, %v1041_v52  ;;  %v2177_v52 = vpack.c.bf16 %v1443_v49, %v1441_v48  ;;  %v2179_v53 = vpack.c.bf16 %v1448_v51, %v1446_v50 }
 0x458   : > { %2176 = vmatprep.subr.bf16.mxu0 %v2175_v47 }
 0x459   : > { %2105 = vmatmul.mubr.msk.f32.vlgmr.msra.gmra.mrb[2].mxu1 %vm796_vm3, %v1047_v55  ;;  %v1447_v55 = vld [vmem:[#allocation16 + $0x50] sm:$0xff]  ;;  %2178 = vmatpush1.bf16.msra.mxu0 %v2177_v52 }
 0x45a   : > { %2158 = vmatpush1.bf16.msra.mxu1 %v2157_v54  ;;  %1293 = vmatprep.mubr.f32.mxu1 %v2913_v10  ;;  %v1445_v54 = vld [vmem:[#allocation16 + $0x40] sm:$0xff] }
 0x45b   : > { %2160 = vmatprep.subr.bf16.mxu1 %v2159_v56  ;;  %v1450_v56 = vld [vmem:[#allocation16 + $0x68] sm:$0xff]  ;;  %v2181_v58 = vpack.c.bf16 %v1447_v55, %v1445_v54  ;;  %2180 = vmatprep.subr.bf16.mxu0 %v2179_v53  ;;  %v1668_v55 = vld [vmem:[%s3858_s4 + $0x18] sm:$0xff] }
 0x45c   : > { %v2183_v59 = vpack.c.bf16 %v1452_v57, %v1450_v56  ;;  %v1669_v57 = vld [vmem:[%s3858_s4 + $0x20] sm:$0xff] }
 0x45d   : > { %2182 = vmatpush1.bf16.msra.mxu0 %v2181_v58  ;;  %v1670_v58 = vld [vmem:[%s3858_s4 + $0x28] sm:$0xff] }
 0x45e   : > { %2162 = vmatpush1.bf16.msra.mxu1 %v2161_v61  ;;  %v1451_v61 = vld [vmem:[#allocation16 + $0x70] sm:$0xff]  ;;  %2184 = vmatprep.subr.bf16.mxu0 %v2183_v59  ;;  %v2210_v59 = vpack.c.bf16 %v1670_v58, %v1669_v57 }
 0x45f   : > { %2164 = vmatprep.subr.bf16.mxu1 %v2163_v62  ;;  %v1422_v62 = vld [vmem:[%s3856_s8 + $0x8] sm:$0xff]  ;;  %v2185_v0 = vpack.c.bf16 %v1451_v61, %v1449_v60  ;;  %v1671_v60 = vld [vmem:[%s3858_s4 + $0x30] sm:$0xff]  ;;  %v1672_v61 = vld [vmem:[%s3858_s4 + $0x38] sm:$0xff] }
 0x460   : > { %v2187_v1 = vpack.c.bf16 %v1424_v63, %v1422_v62  ;;  %v2213_v62 = vpack.c.bf16 %v1672_v61, %v1671_v60 }
 0x461   : > { %2186 = vmatpush1.bf16.msra.mxu0 %v2185_v0 }
 0x462   : > { %2166 = vmatpush1.bf16.msra.mxu1 %v2165_v3  ;;  %v1423_v3 = vld [vmem:[%s3856_s8 + $0x10] sm:$0xff]  ;;  %2188 = vmatprep.subr.bf16.mxu0 %v2187_v1 }
 0x463   : > { %2168 = vmatprep.subr.bf16.mxu1 %v2167_v4  ;;  %v1426_v4 = vld [vmem:[%s3856_s8 + $0x28] sm:$0xff] }
 0x464   : > { %2019 = vmatmul.mubr.msk.f32.vlgmr.msra.gmra.mrb[4].mxu0 %vm796_vm3, %v1455_v6 }
 0x465   : > { %1599 = vmatprep.mubr.f32.mxu0 %v2913_v10 }
 0x466   : > { %2170 = vmatpush1.bf16.msra.mxu1 %v2169_v8  ;;  %v2189_v8 = vpack.c.bf16 %v1423_v3, %v1421_v2 }
 0x467   : > { %1303 = vmatprep.subr.mxu1 %v1210_v9  ;;  %v2191_v9 = vpack.c.bf16 %v1428_v5, %v1426_v4 }
 0x468   : > { %2190 = vmatpush1.bf16.msra.mxu0 %v2189_v8 }
 0x469   : > { %2015 = vmatmul.mubr.msk.f32.vlgmr.msra.gmra.mrb[4].mxu1 %vm796_vm3, %v3452_v20  ;;  %v3549_v20 = vshrl.u32 %v1375_v21, 7  ;;  %2192 = vmatprep.subr.bf16.mxu0 %v2191_v9  ;;  %v1436_v21 = vld [vmem:[%s3856_s8 + $0x78] sm:$0xff] }
 0x46a   : > { %1304 = vmatpush1.msra.mxu1 %v1209_v11  ;;  %1367 = vmatprep.mubr.f32.mxu1 %v2913_v10  ;;  %v1425_v11 = vld [vmem:[%s3856_s8 + $0x20] sm:$0xff] }
 0x46b   : > { %2203 = vmatprep.subr.bf16.mxu1 %v2912_v7  ;;  %v1377_v22 = vsub.s32 0, %v3549_v20  ;;  %v1381_v24 = vsub.s32 1, %v3549_v20  ;;  %v1665_v20 = vld [vmem:[%s3858_s4] sm:$0xff] }
 0x46d   : > { %v1378_v25 = vrot.slane %v1227_v23, %v1377_v22  ;;  %v1382_v26 = vrot.slane %v1227_v23, %v1381_v24 }
 0x52c   : > { %v1126_v14 = vpop.f32.mrb[2].mxu1 }
 0x52d   : > { %v1197_v16 = vadd.f32 %v1196_v12, %v1126_v14  ;;  %v2106_v17 = vpop.f32.mrb[3].mxu1  ;;  %v1427_v12 = vld [vmem:[%s3856_s8 + $0x30] sm:$0xff]  ;;  %v1432_v14 = vld [vmem:[%s3856_s8 + $0x58] sm:$0xff] }
 0x52e   : > { %v1429_v17 = vld [vmem:[%s3856_s8 + $0x40] sm:$0xff] }
 0x52f   : > { %v1207_v18 = vadd.f32 %v2014_v15, %v1197_v16  ;;  %v2193_v15 = vpack.c.bf16 %v1427_v12, %v1425_v11  ;;  %v2195_v16 = vpack.c.bf16 %v1432_v14, %v1430_v13 }
 0x531   : > { %v1208_v19 = vmax.f32 %v1207_v18, 0.0  ;;  %v1431_v18 = vld [vmem:[%s3856_s8 + $0x50] sm:$0xff]  ;;  %2194 = vmatpush1.bf16.msra.mxu0 %v2193_v15 }
 0x532   : > { %2196 = vmatprep.subr.bf16.mxu0 %v2195_v16 }
 0x533   : > { %2016 = vmatmul.mubr.msk.f32.vlgmr.msra.gmra.mrb[4].mxu1 %vm870_vm1, %v1208_v19  ;;  %v1434_v19 = vld [vmem:[%s3856_s8 + $0x68] sm:$0xff] }
 0x534   : > { %2128 = vmatprep.mubr.msk.f32.mxu1 %vm2914_vm2, %v2913_v10  ;;  %v2197_v10 = vpack.c.bf16 %v1431_v18, %v1429_v17  ;;  %v2199_v23 = vpack.c.bf16 %v1436_v21, %v1434_v19 }
 0x536   : > { %2198 = vmatpush1.bf16.msra.mxu0 %v2197_v10 }
 0x537   : > { %2200 = vmatprep.subr.bf16.mxu0 %v2199_v23 }
 0x606   : > { %v1369_v27 = vpop.f32.mrb[4].mxu1 }
 0x607   : > { %v1385_v28 = vadd.f32 %v1378_v25, %v1369_v27  ;;  %v1371_v29 = vpop.f32.mrb[5].mxu1  ;;  %v1433_v25 = vld [vmem:[%s3856_s8 + $0x60] sm:$0xff] }
 0x608   : > { %v3557_v30 = vadd.f32 %v1382_v26, %v1371_v29  ;;  %v1435_v26 = vld [vmem:[%s3856_s8 + $0x70] sm:$0xff]  ;;  %s2928_s8 = smov [#allocation21]  }
 0x609   : > { %v2017_v33 = vmul.f32 -1.442695, %v1385_v28  ;;  %v2201_v27 = vpack.c.bf16 %v1435_v26, %v1433_v25  ;;  %s1778_s26 = sshll.u32 %s2928_s8, 4  ;;  %s1779_s26 = int_to_ptr.vmem [resolvable:$true] %s1778_s26 }
 0x60a   : > { %2419 = vtanh.f32 %v3557_v30  ;;  %p2760_p10 = scmp.lt.s32.totalorder %s1779_s26, %s1779_s26 }
 0x60b   : > { %2421 = vpow2.f32 %v2017_v33  ;;  %2202 = vmatpush1.bf16.msra.mxu0 %v2201_v27 }
 0x614   : > { %v2420_v31 = vpop.eup %2419 }
 0x615   : > { %1406 = vrot.lane.b32.xlu1 %v2420_v31, %s3794_s10  ;;  %v2422_v34 = vpop.eup %2421 }
 0x616   : > { %v1393_v35 = vadd.f32 1.0, %v2422_v34  ;;  %v1457_v34 = vld [vmem:[#allocation23 + $0x8] sm:$0xff] }
 0x618   : > { %2423 = vrcp.f32 %v1393_v35  ;;  %v2018_v35 = vmul.f32 -1.442695, %v3557_v30 }
 0x619   : > { %1401 = vrot.lane.b32.xlu1 %v1228_v32, %s3794_s10 }
 0x622   : > { %v3562_v36 = vpop.eup %2423 }
 0x687   : > { %v1407_v37 = vpop.permute.xlu1 %1406 }
 0x688   : > { %v1409_v38 = vmul.f32 %v3562_v36, %v1407_v37 }
 0x68a   : > { %1411 = vrot.lane.b32.xlu0 %v1409_v38, %s3794_s10 }
 0x68b   : > { %v1402_v28 = vpop.permute.xlu1 %1401 }
 0x68c   : > { %v1404_v29 = vmul.f32 %v3562_v36, %v1402_v28  ;;  %v1453_v36 = vld [vmem:[#allocation17] sm:$0x3] }
 0x68d   : > { %v1610_v42 = vrot.slane %v1453_v36, %v1377_v22  ;;  %v1614_v43 = vrot.slane %v1453_v36, %v1381_v24  ;;  %v1666_v22 = vld [vmem:[%s3858_s4 + $0x8] sm:$0xff]  ;;  %v1667_v24 = vld [vmem:[%s3858_s4 + $0x10] sm:$0xff] }
 0x68e   : > { %v2204_v54 = vpack.c.bf16 %v1666_v22, %v1665_v20  ;;  %v2207_v56 = vpack.c.bf16 %v1668_v55, %v1667_v24 }
 0x690   : > { %2205 = vmatpush3.bf16.msra.mxu1 %v2204_v54 }
 0x691   : > { %2206 = vmatprep.subr.bf16.mxu1 %v2912_v7 }
 0x694   : > { %2208 = vmatpush3.bf16.msra.mxu1 %v2207_v56 }
 0x695   : > { %2209 = vmatprep.subr.bf16.mxu1 %v2912_v7 }
 0x698   : > { %2211 = vmatpush3.bf16.msra.mxu1 %v2210_v59 }
 0x699   : > { %2212 = vmatprep.subr.bf16.mxu1 %v2912_v7 }
 0x69c   : > { %2214 = vmatpush3.bf16.msra.mxu1 %v2213_v62 }
 0x6fc   : > { %v1412_v31 = vpop.permute.xlu0 %1411 }
 0x6fd   : > { %v1414_v32 = vadd.f32 %v1412_v31, %v1404_v29 }
 0x6ff   : > { %2425 = vtanh.f32 %v1414_v32 }
 0x700   : > { %2427 = vpow2.f32 %v2018_v35 }
 0x709   : > { %v2426_v33 = vpop.eup %2425 }
 0x70a   : > { %1417 = vrot.lane.b32.xlu1 %v2426_v33, %s3857_s28  ;;  %v2428_v37 = vpop.eup %2427 }
 0x70b   : > { %v1394_v38 = vadd.f32 1.0, %v2428_v37 }
 0x70d   : > { %2429 = vrcp.f32 %v1394_v38 }
 0x70e   : > { %1633 = vrot.lane.b32.xlu1 %v1457_v34, %s3857_s28 }
 0x717   : > { %v2430_v39 = vpop.eup %2429 }
 0x77c   : > { %v1418_v40 = vpop.permute.xlu1 %1417 }
 0x77d   : > { %v1420_v41 = vmul.f32 %v2430_v39, %v1418_v40 }
 0x77f   : > { %1653 = vst.msk [vmem:[#allocation21] sm:$0xff] %vm796_vm3, %v1420_v41  ;;  %2020 = vmatmul.mubr.msk.f32.vlgmr.msra.gmra.mrb[4].mxu0 %vm796_vm3, %v1420_v41 }
 0x780   : > { %v1634_v63 = vpop.permute.xlu1 %1633 }
 0x852   : > { %v1601_v44 = vpop.f32.mrb[4].mxu0 }
 0x853   : > { %v1617_v30 = vadd.f32 %v1610_v42, %v1601_v44  ;;  %v1603_v45 = vpop.f32.mrb[5].mxu0 }
 0x854   : > { %v1618_v46 = vadd.f32 %v1614_v43, %v1603_v45 }
 0x855   : > { %v2021_v48 = vmul.f32 -1.442695, %v1617_v30 }
 0x856   : > { %2431 = vtanh.f32 %v1618_v46  ;;  %v2022_v5 = vmul.f32 -1.442695, %v1618_v46 }
 0x857   : > { %2433 = vpow2.f32 %v2021_v48 }
 0x860   : > { %v2432_v47 = vpop.eup %2431 }
 0x861   : > { %1638 = vrot.lane.b32.xlu0 %v2432_v47, %s3857_s28  ;;  %v2434_v49 = vpop.eup %2433 }
 0x862   : > { %v1625_v50 = vadd.f32 1.0, %v2434_v49 }
 0x864   : > { %2435 = vrcp.f32 %v1625_v50 }
 0x86e   : > { %v2436_v51 = vpop.eup %2435 }
 0x86f   : > { %v1636_v0 = vmul.f32 %v2436_v51, %v1634_v63 }
 0x8d3   : > { %v1639_v52 = vpop.permute.xlu0 %1638 }
 0x8d4   : > { %v1641_v53 = vmul.f32 %v2436_v51, %v1639_v52 }
 0x8d6   : > { %1643 = vrot.lane.b32.xlu0 %v1641_v53, %s3857_s28 }
 0x8da   : > { %1655 = vrot.lane.b32.xlu0 %v1414_v32, %s3857_s28 }
 0x948   : > { %v1644_v1 = vpop.permute.xlu0 %1643 }
 0x949   : > { %v1646_v2 = vadd.f32 %v1644_v1, %v1636_v0 }
 0x94b   : > { %2437 = vtanh.f32 %v1646_v2 }
 0x94c   : > { %v1656_v3 = vpop.permute.xlu0 %1655  ;;  %2439 = vpow2.f32 %v2022_v5 }
 0x94d   : > { %1658 = vst.msk [vmem:[#allocation23] sm:$0xff] %vm796_vm3, %v1656_v3 }
 0x955   : > { %v2438_v4 = vpop.eup %2437 }
 0x956   : > { %1649 = vrot.lane.b32.xlu1 %v2438_v4, %s3857_s28  ;;  %v2440_v6 = vpop.eup %2439 }
 0x957   : > { %v1626_v8 = vadd.f32 1.0, %v2440_v6 }
 0x959   : > { %2441 = vrcp.f32 %v1626_v8 }
 0x95a   : > { %1661 = vrot.lane.b32.xlu1 %v1646_v2, %s3857_s28  ;;  %s2753_s28 = scalar_lea.vmem %s1779_s26, 256 }
 0x95b   : > { %p2754_p4 = scmp.ne.s32.totalorder %s1779_s26, %s2753_s28  ;;  %p2761_p11 = scmp.lt.s32.totalorder %s2753_s28, %s2753_s28 }
 0x95d   : > { %p2755_p5 = pnand %p2754_p4, %p3859_p2  ;;  %p2762_p8 = por %p2761_p11, %p2760_p10 }
 0x95f   : > { %p2756_p3 = pneg %p2755_p5 }
 0x961   : > { %p2763_p0 = pnand %p2762_p8, %p2756_p3 }
 0x963   : > { %v2442_v7 = vpop.eup %2441 }
 0x9c8   : > { %v1650_v9 = vpop.permute.xlu1 %1649 }
 0x9c9   : > { %v1652_v11 = vmul.f32 %v2442_v7, %v1650_v9 }
 0x9cb   : > { %1659 = vst.msk [vmem:[#allocation21 + $0x8] sm:$0xff] %vm796_vm3, %v1652_v11  ;;  %2129 = vmatmul.mubr.msk.f32.vlgmr.msra.gmra.mrb[6].mxu1 %vm796_vm3, %v1652_v11 }
 0x9cc   : > { %v1662_v12 = vpop.permute.xlu1 %1661 }
 0x9cd   : > { %1664 = vst.msk [vmem:[#allocation23 + $0x8] sm:$0xff] %vm796_vm3, %v1662_v12 }
 0x9ce   : > { %2766 = shalt.err (!%p2763_p0)
}
 0x9cf   : > { %s3860_s20 = sld [smem:[#allocation49_spill]]  ;;  %p3861_p6 = pmov %p3859_p2 }
 0x9d5   : > { %s2767_s5 = scalar_lea.hbm %s3860_s20, 256 }
 0x9d6   : > { %p2768_p7 = scmp.ne.s32.totalorder %s3860_s20, %s2767_s5  ;;  %p2773_p13 = scmp.lt.u32.totalorder %s2767_s5, %s3860_s20 }
 0x9d8   : > { %p2769_p9 = pnand %p2768_p7, %p3861_p6 }
 0x9da   : > { %p2770_p12 = pneg %p2769_p9 }
 0x9dc   : > { %p2775_p1 = pnand %p2773_p13, %p2770_p12 }
 0x9de   : > { %2778 = shalt.err (!%p2775_p1)
}
 0x9df   : > { %s2929_s28 = smov 128   ;;  %s2930_s4 = smov 8  }
 0x9e0   : > { %p3862_p4 = pmov %p3859_p2  ;;  %s2931_s10 = smov [#allocation23]  }
 0x9e1   : > { %s1791_s29 = sshll.u32 %s2931_s10, 4  ;;  %s1792_s29 = int_to_ptr.vmem [resolvable:$true] %s1791_s29 }
 0x9e2   : > { %2263 = dma.vmem_to_hbm [thread:$0]  (%p3862_p4), %s1779_s26, 256, %s3860_s20, [#allocation22], %s2929_s28, %s2929_s28, %s2930_s4  }
 0x9e3   : > { %s2779_s12 = scalar_lea.vmem %s1792_s29, 256  ;;  %p3863_p5 = pmov %p3862_p4 }
 0x9e4   : > { %p2780_p2 = scmp.ne.s32.totalorder %s1792_s29, %s2779_s12  ;;  %p2786_p11 = scmp.lt.s32.totalorder %s1792_s29, %s1792_s29 }
 0x9e5   : > { %p2787_p8 = scmp.lt.s32.totalorder %s2779_s12, %s2779_s12 }
 0x9e6   : > { %p2781_p3 = pnand %p2780_p2, %p3863_p5 }
 0x9e7   : > { %p2788_p0 = por %p2787_p8, %p2786_p11 }
 0x9e8   : > { %p2782_p10 = pneg %p2781_p3 }
 0x9ea   : > { %p2789_p7 = pnand %p2788_p0, %p2782_p10 }
 0x9ec   : > { %2792 = shalt.err (!%p2789_p7)
}
 0x9ed   : > { %s3864_s8 = sld [smem:[#allocation50_spill]]  ;;  %p3865_p9 = pmov %p3862_p4 }
 0x9f3   : > { %s2793_s13 = scalar_lea.hbm %s3864_s8, 256 }
 0x9f4   : > { %p2794_p6 = scmp.ne.s32.totalorder %s3864_s8, %s2793_s13  ;;  %p2799_p1 = scmp.lt.u32.totalorder %s2793_s13, %s3864_s8 }
 0x9f6   : > { %p2795_p12 = pnand %p2794_p6, %p3865_p9 }
 0x9f8   : > { %p2796_p13 = pneg %p2795_p12 }
 0x9fa   : > { %p2801_p4 = pnand %p2799_p1, %p2796_p13 }
 0x9fc   : > { %2804 = shalt.err (!%p2801_p4)
}
 0x9fd   : > { %p3866_p2 = pmov %p3863_p5  ;;  %v2023_v13 = vld [vmem:[#allocation19] ss:$0 sm:$0xff]  ;;  %s2026_s5 = sshll.u32 %s3059_s3, 7 }
 0x9fe   : > { %s1768_s25 = sshll.u32 %s3401_s7, 4  ;;  %s3867_s26 = sld [smem:[#allocation48_spill]]  ;;  %s3705_s25 = int_to_ptr.vmem [resolvable:$true] %s1768_s25 }
 0x9ff   : > { %2265 = dma.vmem_to_hbm [thread:$0]  (%p3866_p2), %s1792_s29, 256, %s3864_s8, [#allocation22], %s2929_s28, %s2929_s28, %s2930_s4  }
 0xa00   : > { %s1755_s14 = scalar_lea.sflag [#allocation4], %s3371_s9  ;;  %s2805_s4 = scalar_lea.vmem %s3705_s25, 128 }
 0xa01   : > { %p2806_p5 = scmp.ne.s32.totalorder %s3705_s25, %s2805_s4  ;;  %p3868_p3 = scmp.ne.s32.totalorder %s3835_s11, 0 }
 0xa02   : > { %s2932_s28 = smov [#allocation20]  }
 0xa03   : > { %p2807_p10 = pnand %p2806_p5, %p3868_p3  ;;  %s2809_s29 = sshll.u32 %s2932_s28, 4  ;;  %s2810_s29 = int_to_ptr.vmem [resolvable:$false] %s2809_s29 }
 0xa04   : > { %s3703_s6 = scalar_lea.hbm %s3867_s26, %s2026_s5  ;;  %s2811_s10 = scalar_lea.vmem %s2810_s29, 256 }
 0xa05   : > { %p2808_p11 = pneg %p2807_p10  ;;  %p2812_p8 = scmp.lt.s32.totalorder %s3705_s25, %s2810_s29 }
 0xa06   : > { %p2813_p0 = scmp.lt.s32.totalorder %s2811_s10, %s2805_s4 }
 0xa08   : > { %p2814_p7 = por %p2813_p0, %p2812_p8 }
 0xa0a   : > { %p2815_p6 = pnand %p2814_p7, %p2808_p11 }
 0xa9e   : > { %v1749_v14 = vpop.f32.mrb[6].mxu1 }
 0xa9f   : > { %v1750_v15 = vadd.f32 %v2023_v13, %v1749_v14  ;;  %v2130_v16 = vpop.f32.mrb[7].mxu1 }
 0xaa1   : > { %1753 = vst.msk [vmem:[%s3401_s7] sm:$0xff] %vm870_vm1, %v1750_v15 }
 0xaa2   : > { %2818 = shalt.err (!%p2815_p6)
}
 0xaa3   : > { %s2819_s9 = scalar_lea.hbm %s3703_s6, 128  ;;  %s2823_s5 = scalar_lea.hbm %s3867_s26, 512 }
 0xaa4   : > { %p2820_p9 = scmp.ne.s32.totalorder %s3703_s6, %s2819_s9  ;;  %p2824_p1 = scmp.lt.u32.totalorder %s3703_s6, %s3867_s26 }
 0xaa5   : > { %p2825_p4 = scmp.lt.u32.totalorder %s2823_s5, %s2819_s9  ;;  %p2827_p5 = scmp.lt.u32.totalorder %s2819_s9, %s3703_s6 }
 0xaa6   : > { %p2821_p12 = pnand %p2820_p9, %p3868_p3 }
 0xaa7   : > { %p2826_p2 = por %p2825_p4, %p2824_p1 }
 0xaa8   : > { %p2822_p13 = pneg %p2821_p12 }
 0xaa9   : > { %p2828_p10 = por %p2827_p5, %p2826_p2 }
 0xaab   : > { %p2829_p11 = pnand %p2828_p10, %p2822_p13 }
 0xaad   : > { %2832 = shalt.err (!%p2829_p11)
}
 0xaae   : > { %2261 = dma.vmem_to_hbm [thread:$0]  (%p3868_p3), %s3705_s25, 128, %s3703_s6, %s1755_s14  }
 0xaaf   : > { %p3869_p8 = scmp.eq.s32.totalorder %s3059_s3, 3 }
 0xab1   : > { %2874 = dma.done.wait (%p3869_p8), [#allocation22], 512   ;;  %p3870_p0 = pmov %p3869_p8 }
 0xab3   : > { %2876 = vsyncadd (%p3870_p0), [#allocation22], 4294966784 }
 0xab4 PF: > { %p2335_p7 = scmp.ge.s32.totalorder %s2895_s24, 2  ;;  %s1814_s4 = sand.u32 1, %s2883_s1  }
 0xab5   : > { %p3871_p6 = scmp.ne.s32.totalorder %s3836_s0, 0  ;;  %s1815_s28 = scalar_lea.sflag [#allocation4], %s1814_s4 }
 0xab7   : > { %p2307_p9 = pnand %p2335_p7, %p3871_p6 }
 0xab9   : > { %2878 = dma.done.wait (!%p2307_p9), %s1815_s28, 128  }
 0xaba   : > { %2880 = vsyncadd (!%p2307_p9), %s1815_s28, 4294967168  ;;  %p40_p3 = scmp.ge.s32.totalorder %s3293_s2, 6   ;;  %s3872_s1 = smov %s2887_s22 }
 0xabb   : > { %s3873_s22 = smov %s2891_s23  ;;  %s3874_s23 = smov %s3304_s21 }
 0xabc   : > { %s3875_s24 = smov %s3293_s2  ;;  %42 = sbr.rel (!%p40_p3) target bundleno = 31 (0x1f), region = 199 }
 0xac3   :  { %1820 = vsyncpa [#allocation3], 1 }
 0xac4   :  { %1822 = vsyncpa [#allocation3 + $0x1], 1 }
 0xac5   :  { %1823 = vsyncpa [#allocation6], 1 }
 0xac6   :  { %1824 = vsyncpa [#allocation9], 1 }
 0xac7   :  { %1825 = vsyncpa [#allocation12], 1 }
 0xac8   :  { %1826 = vsyncpa [#allocation15], 1 }
 0xac9   :  { %1827 = vsyncpa [#allocation18], 1 }
 0xaca   :  { %1828 = vsyncpa [#allocation4], 1 }
 0xacb   :  { %1830 = vsyncpa [#allocation4 + $0x1], 1 }
 0xacc   :  { %1831 = vsyncpa [#allocation22], 1 }

</bundles_post_ra>
